<compile_context>
chip_gen: v7x
topology: tpu7x:2x2x1
jax: 0.10.0
libtpu: 0.0.40
codegen_flags: <defaults>
</compile_context>

<pallas_src>
import functools

import jax
import jax.numpy as jnp
from jax.experimental import pallas as pl
from jax.experimental.pallas import tpu as pltpu

SPARSITY_THRESHOLD = 0.01   # cfg.AFNO2D_sparsity_threshold


def _softshrink(x, lam):
    return jnp.where(x > lam, x - lam, jnp.where(x < -lam, x + lam, 0.0))


def _block_diag(w):
    """(K, a, b) -> (K*a, K*b) block-diagonal matrix."""
    K, a, b = w.shape
    eye = jnp.eye(K, dtype=w.dtype)
    return (w[:, :, None, :] * eye[:, None, :, None]).reshape(K * a, K * b)


def _afno_kernel(c, lam, xr_ref, xi_ref, w1_ref, b1_ref, w2_ref, b2_ref,
                 yr_ref, yi_ref):
    """One (weight-block, row-tile) step of the frequency-domain block MLP.

    xr_ref, xi_ref : (TN, c) f32   real / imag channels of rfft2(x) for this block
    w1_ref         : (1, 2c, 2h) bf16  packed complex weight [[Wr, Wi], [-Wi, Wr]]
    b1_ref         : (1, 1, 2h)  f32   packed bias [br | bi]
    w2_ref         : (1, 2h, 2c) bf16
    b2_ref         : (1, 1, 2c)  f32
    yr_ref, yi_ref : (TN, c) f32   softshrink(MLP(x)) * x   (complex multiply)
    """
    xr = xr_ref[...]
    xi = xi_ref[...]

    # bf16 MXU matmuls with f32 accumulation; [xr | xi] packing happens in VMEM.
    z = jnp.concatenate([xr, xi], axis=-1).astype(jnp.bfloat16)            # (TN, 2c)
    o1 = jnp.dot(z, w1_ref[0], preferred_element_type=jnp.float32) + b1_ref[0]
    o1 = jnp.maximum(o1, 0.0)                                              # ReLU
    o2 = (jnp.dot(o1.astype(jnp.bfloat16), w2_ref[0],
                  preferred_element_type=jnp.float32) + b2_ref[0])
    o2 = _softshrink(o2, lam)                                              # f32 epilogue

    # complex multiply with the original spectrum: (o2r + i o2i) * (xr + i xi)
    o2r = o2[:, :c]
    o2i = o2[:, c:]
    yr_ref[...] = o2r * xr - o2i * xi        # full-ref stores (lane-dense when c%128==0)
    yi_ref[...] = o2r * xi + o2i * xr


def _pick_row_tile(n, cap):
    """Largest multiple-of-8 tile <= cap that divides n, preferring >= 2 grid steps
    (so the row axis can split across v7x's two TensorCores). None -> caller pads."""
    if n % 8 != 0:
        return None
    cap = max(8, (min(cap, n) // 8) * 8)
    single = None
    for tn in range(cap, 7, -8):
        if n % tn == 0:
            if n // tn >= 2:
                return tn
            single = tn
    return single


def afno2d_channelfirst(x, params, num_blocks,
                        sparsity_threshold=SPARSITY_THRESHOLD, row_tile=1024):
    """JAX/Pallas forward of AFNO2D_channelfirst. x: [B, C, H, W] (NCHW)."""
    w1, b1, w2, b2 = params      # (2,K,bs,hid), (2,K,hid), (2,K,hid,bs), (2,K,bs)
    B, C, H, W = x.shape
    K = num_blocks
    bs = C // K
    hid = w1.shape[-1]
    dtype = x.dtype

    # ---- forward FFT (no Pallas FFT primitive) ------------------------------------------
    xf = jnp.fft.rfft2(x.astype(jnp.float32), axes=(2, 3), norm='ortho')    # (B,C,H,Wf)
    Wf = xf.shape[-1]
    # Planar real/imag slabs.  Under jit the transpose fuses with the unavoidable
    # complex->planar extraction: one HBM pass per slab, no separate [real|imag] concat.
    xt = jnp.transpose(xf, (0, 2, 3, 1))                                    # (B,H,Wf,C)
    xr = jnp.real(xt).reshape(-1, C)
    xi = jnp.imag(xt).reshape(-1, C)
    N = B * H * Wf

    # ---- weight packing (complex matmul as one real matmul on [xr | xi]) ----------------
    per_block = (K > 1) and (bs % 128 == 0)
    if per_block:
        # Compact per-block weights; the block index becomes a grid axis (K-fold fewer
        # MXU flops / weight bytes than densifying the block-diagonal matrix).
        G, c, h = K, bs, hid
        w1r, w1i = w1[0], w1[1]                                    # (K, bs, hid)
        w2r, w2i = w2[0], w2[1]                                    # (K, hid, bs)
        W1p = jnp.concatenate([jnp.concatenate([w1r, w1i], axis=2),
                               jnp.concatenate([-w1i, w1r], axis=2)], axis=1)  # (K,2bs,2hid)
        W2p = jnp.concatenate([jnp.concatenate([w2r, w2i], axis=2),
                               jnp.concatenate([-w2i, w2r], axis=2)], axis=1)  # (K,2hid,2bs)
        b1p = jnp.concatenate([b1[0], b1[1]], axis=-1)[:, None, :]             # (K,1,2hid)
        b2p = jnp.concatenate([b2[0], b2[1]], axis=-1)[:, None, :]             # (K,1,2bs)
    else:
        # Small block_size (e.g. toy bs=8): densify the block diagonal so the MXU sees
        # one fused matmul per layer instead of K tiny ones.
        G, c, h = 1, C, K * hid
        w1r, w1i = _block_diag(w1[0]), _block_diag(w1[1])          # (C, K*hid)
        w2r, w2i = _block_diag(w2[0]), _block_diag(w2[1])          # (K*hid, C)
        W1p = jnp.concatenate([jnp.concatenate([w1r, w1i], axis=1),
                               jnp.concatenate([-w1i, w1r], axis=1)], axis=0)[None]
        W2p = jnp.concatenate([jnp.concatenate([w2r, w2i], axis=1),
                               jnp.concatenate([-w2i, w2r], axis=1)], axis=0)[None]
        b1p = jnp.concatenate([b1[0].reshape(-1), b1[1].reshape(-1)]).reshape(1, 1, 2 * h)
        b2p = jnp.concatenate([b2[0].reshape(-1), b2[1].reshape(-1)]).reshape(1, 1, 2 * c)
    # bf16 weights: ~2-3x MXU rate, half the weight DMA / VMEM bytes.
    W1p = W1p.astype(jnp.bfloat16)
    W2p = W2p.astype(jnp.bfloat16)
    b1p = b1p.astype(jnp.float32)
    b2p = b2p.astype(jnp.float32)

    # ---- VMEM-aware row tiling -----------------------------------------------------------
    w_bytes = 2 * (int(W1p.size) + int(W2p.size)) + 4 * (int(b1p.size) + int(b2p.size))
    # Dense-path weights are grid-constant: single-buffer them when the double-buffer
    # copy would actually cost VMEM (saves half the weight footprint, matters on v7x).
    single_buffer_weights = (G == 1) and (w_bytes > (4 << 20))
    w_bufs = 1 if single_buffer_weights else 2
    try:
        vmem_cap = int(pltpu.get_tpu_info().vmem_capacity_bytes)   # 64 MiB/TC on v7x
    except Exception:
        vmem_cap = 128 * 1024 * 1024
    budget = int(0.70 * vmem_cap)
    # per-row VMEM bytes: 4 double-buffered f32 io streams + in-kernel temporaries.
    per_row = 2 * 4 * (c * 4) + (2 * c * 2 + 2 * h * 4 + 2 * h * 2 + 2 * c * 4)
    row_tile_eff = max(64, (int(row_tile) // 8) * 8)
    while row_tile_eff > 64 and w_bufs * w_bytes + row_tile_eff * per_row > budget:
        row_tile_eff //= 2

    TN = _pick_row_tile(N, row_tile_eff)
    if TN is None:                        # ragged N: fall back to a (small) zero pad
        TN = max(8, min(row_tile_eff, ((N + 7) // 8) * 8))
        if TN >= N and N > 8:
            TN = (((N + 1) // 2) + 7) // 8 * 8    # keep >= 2 row steps (megacore)
    grid_n = pl.cdiv(N, TN)
    Npad = grid_n * TN
    if Npad != N:
        xr = jnp.pad(xr, ((0, Npad - N), (0, 0)))
        xi = jnp.pad(xi, ((0, Npad - N), (0, 0)))

    vmem_need = w_bufs * w_bytes + TN * per_row
    vmem_limit = min(max(vmem_need + (4 << 20), 32 << 20), int(0.8 * vmem_cap))

    # ---- pallas_call -----------------------------------------------------------------------
    act_spec = pl.BlockSpec((TN, c), lambda g, i: (i, g))

    def weight_spec(shape):
        if single_buffer_weights:
            return pl.BlockSpec(shape, lambda g, i: (g, 0, 0),
                                pipeline_mode=pl.Buffered(1))
        return pl.BlockSpec(shape, lambda g, i: (g, 0, 0))

    flops = 4 * G * Npad * (2 * c) * (2 * h) + 12 * Npad * 2 * C
    cost = pl.CostEstimate(flops=int(flops), transcendentals=0,
                           bytes_accessed=int(4 * Npad * C * 4 + w_bytes))

    kernel = functools.partial(_afno_kernel, c, float(sparsity_threshold))
    yr, yi = pl.pallas_call(
        kernel,
        out_shape=(jax.ShapeDtypeStruct((Npad, C), jnp.float32),
                   jax.ShapeDtypeStruct((Npad, C), jnp.float32)),
        grid=(G, grid_n),                    # weight blocks outer, row tiles inner
        in_specs=[act_spec, act_spec,
                  weight_spec((1, 2 * c, 2 * h)), weight_spec((1, 1, 2 * h)),
                  weight_spec((1, 2 * h, 2 * c)), weight_spec((1, 1, 2 * c))],
        out_specs=(act_spec, act_spec),
        input_output_aliases={0: 0, 1: 1},   # reuse xr/xi HBM buffers for yr/yi
        compiler_params=pltpu.CompilerParams(
            dimension_semantics=("parallel", "parallel"),
            vmem_limit_bytes=int(vmem_limit)),
        cost_estimate=cost,
    )(xr, xi, W1p, b1p, W2p, b2p)

    # ---- unpack + inverse FFT ----------------------------------------------------------------
    yf = jax.lax.complex(yr[:N], yi[:N]).reshape(B, H, Wf, C).transpose(0, 3, 1, 2)
    y = jnp.fft.irfft2(yf, s=(H, W), axes=(2, 3), norm='ortho')
    return y.astype(dtype) + x          # residual (bias = input)


def afno2d_reference(x, params, num_blocks, sparsity_threshold=SPARSITY_THRESHOLD):
    """Pure-JAX reference matching the torch forward exactly (f32, highest precision)."""
    w1, b1, w2, b2 = params
    B, C, H, W = x.shape
    K = num_blocks
    bs = C // K
    xf = jnp.fft.rfft2(x.astype(jnp.float32), axes=(2, 3), norm='ortho')
    orig = xf
    xb = xf.reshape(B, K, bs, H, xf.shape[-1])
    ein = functools.partial(jnp.einsum, precision='highest')
    o1r = jax.nn.relu(ein('bkihw,kio->bkohw', jnp.real(xb), w1[0])
                      - ein('bkihw,kio->bkohw', jnp.imag(xb), w1[1])
                      + b1[0][None, :, :, None, None])
    o1i = jax.nn.relu(ein('bkihw,kio->bkohw', jnp.imag(xb), w1[0])
                      + ein('bkihw,kio->bkohw', jnp.real(xb), w1[1])
                      + b1[1][None, :, :, None, None])
    o2r = (ein('bkihw,kio->bkohw', o1r, w2[0])
           - ein('bkihw,kio->bkohw', o1i, w2[1]) + b2[0][None, :, :, None, None])
    o2i = (ein('bkihw,kio->bkohw', o1i, w2[0])
           + ein('bkihw,kio->bkohw', o1r, w2[1]) + b2[1][None, :, :, None, None])
    o2r = _softshrink(o2r, sparsity_threshold)
    o2i = _softshrink(o2i, sparsity_threshold)
    of = (o2r + 1j * o2i).reshape(B, C, H, -1) * orig
    y = jnp.fft.irfft2(of, s=(H, W), axes=(2, 3), norm='ortho')
    return y.astype(x.dtype) + x


if __name__ == "__main__":
    def make_case(key, B, C, H, W, num_blocks, hidden_size_factor=1, scale=0.02):
        bs = C // num_blocks
        hid = bs * hidden_size_factor
        k0, k1, k2, k3, k4 = jax.random.split(key, 5)
        x = jax.random.normal(k0, (B, C, H, W), jnp.float32)
        w1 = scale * jax.random.normal(k1, (2, num_blocks, bs, hid), jnp.float32)
        b1 = scale * jax.random.normal(k2, (2, num_blocks, hid), jnp.float32)
        w2 = scale * jax.random.normal(k3, (2, num_blocks, hid, bs), jnp.float32)
        b2 = scale * jax.random.normal(k4, (2, num_blocks, bs), jnp.float32)
        return x, (w1, b1, w2, b2)

    key = jax.random.PRNGKey(0)
    key_small, key_large = jax.random.split(key)

    # Case 1 (toy config): hidden_size=32, num_blocks=4 -> block_size=8,
    # exercises the dense packed block-diagonal path.
    x, params = make_case(key_small, B=2, C=32, H=16, W=16, num_blocks=4)
    fwd = jax.jit(functools.partial(afno2d_channelfirst, num_blocks=4))
    y = jax.block_until_ready(fwd(x, params))
    y_ref = jax.block_until_ready(afno2d_reference(x, params, 4))
    assert y.shape == x.shape and y.dtype == x.dtype
    err = float(jnp.max(jnp.abs(y - y_ref)))
    assert jnp.allclose(y, y_ref, atol=1e-2, rtol=1e-2), err

    # Case 2: lane-aligned block_size (bs=128) -> compact per-block weight path
    # (weight blocks on a second grid axis, no block-diagonal densification).
    x2, params2 = make_case(key_large, B=1, C=512, H=8, W=8, num_blocks=4)
    fwd2 = jax.jit(functools.partial(afno2d_channelfirst, num_blocks=4))
    y2 = jax.block_until_ready(fwd2(x2, params2))
    y2_ref = jax.block_until_ready(afno2d_reference(x2, params2, 4))
    err2 = float(jnp.max(jnp.abs(y2 - y2_ref)))
    assert jnp.allclose(y2, y2_ref, atol=1e-2, rtol=1e-2), err2

    print("KERNEL_OK")
</pallas_src>

<mosaic_0001>
module attributes {stable_mosaic.version = 11 : i64} {
  func.func @_afno_kernel(%arg0: i32, %arg1: i32, %arg2: memref<144x32xf32, #tpu.memory_space<vmem>>, %arg3: memref<144x32xf32, #tpu.memory_space<vmem>>, %arg4: memref<1x64x64xbf16, #tpu.memory_space<vmem>>, %arg5: memref<1x1x64xf32, #tpu.memory_space<vmem>>, %arg6: memref<1x64x64xbf16, #tpu.memory_space<vmem>>, %arg7: memref<1x1x64xf32, #tpu.memory_space<vmem>>, %arg8: memref<144x32xf32, #tpu.memory_space<vmem>>, %arg9: memref<144x32xf32, #tpu.memory_space<vmem>>) attributes {dimension_semantics = [#tpu.dimension_semantics<parallel>, #tpu.dimension_semantics<parallel>], iteration_bounds = array<i64: 1, 2>, scalar_prefetch = 0 : i64, scratch_operands = 0 : i64, tpu.core_type = #tpu.core_type<tc>, window_params = [{transform_indices = @transform_0, window_bounds = array<i64: 144, 32>}, {transform_indices = @transform_1, window_bounds = array<i64: 144, 32>}, {transform_indices = @transform_2, window_bounds = array<i64: 1, 64, 64>}, {transform_indices = @transform_3, window_bounds = array<i64: 1, 1, 64>}, {transform_indices = @transform_4, window_bounds = array<i64: 1, 64, 64>}, {transform_indices = @transform_5, window_bounds = array<i64: 1, 1, 64>}, {transform_indices = @transform_6, window_bounds = array<i64: 144, 32>}, {transform_indices = @transform_7, window_bounds = array<i64: 144, 32>}]} {
    %c0 = arith.constant 0 : index
    %c0_0 = arith.constant 0 : index
    %0 = vector.load %arg2[%c0, %c0_0] : memref<144x32xf32, #tpu.memory_space<vmem>>, vector<144x32xf32>
    %c0_1 = arith.constant 0 : index
    %c0_2 = arith.constant 0 : index
    %1 = vector.load %arg3[%c0_1, %c0_2] : memref<144x32xf32, #tpu.memory_space<vmem>>, vector<144x32xf32>
    %2 = tpu.concatenate %0, %1 in 1 : vector<144x32xf32>, vector<144x32xf32> -> vector<144x64xf32>
    %3 = arith.truncf %2 : vector<144x64xf32> to vector<144x64xbf16>
    %c0_3 = arith.constant 0 : index
    %c0_4 = arith.constant 0 : index
    %c0_5 = arith.constant 0 : index
    %4 = vector.load %arg4[%c0_3, %c0_4, %c0_5] : memref<1x64x64xbf16, #tpu.memory_space<vmem>>, vector<1x64x64xbf16>
    %5 = vector.shape_cast %4 : vector<1x64x64xbf16> to vector<64x64xbf16>
    %cst = arith.constant dense<0.000000e+00> : vector<144x64xf32>
    %6 = tpu.matmul %3, %5, %cst {dimension_numbers = #tpu.dot_dimension_numbers<[1], [0], [0], [1], [0, 0, 1, 1], [], []>} : vector<144x64xbf16>, vector<64x64xbf16>, vector<144x64xf32> -> vector<144x64xf32>
    %c0_6 = arith.constant 0 : index
    %c0_7 = arith.constant 0 : index
    %c0_8 = arith.constant 0 : index
    %7 = vector.load %arg5[%c0_6, %c0_7, %c0_8] : memref<1x1x64xf32, #tpu.memory_space<vmem>>, vector<1x1x64xf32>
    %8 = vector.shape_cast %7 : vector<1x1x64xf32> to vector<1x64xf32>
    %9 = vector.broadcast %8 : vector<1x64xf32> to vector<144x64xf32>
    %10 = arith.addf %6, %9 : vector<144x64xf32>
    %cst_9 = arith.constant 0.000000e+00 : f32
    %11 = vector.broadcast %cst_9 : f32 to vector<144x64xf32>
    %12 = arith.maximumf %10, %11 : vector<144x64xf32>
    %13 = arith.truncf %12 : vector<144x64xf32> to vector<144x64xbf16>
    %c0_10 = arith.constant 0 : index
    %c0_11 = arith.constant 0 : index
    %c0_12 = arith.constant 0 : index
    %14 = vector.load %arg6[%c0_10, %c0_11, %c0_12] : memref<1x64x64xbf16, #tpu.memory_space<vmem>>, vector<1x64x64xbf16>
    %15 = vector.shape_cast %14 : vector<1x64x64xbf16> to vector<64x64xbf16>
    %cst_13 = arith.constant dense<0.000000e+00> : vector<144x64xf32>
    %16 = tpu.matmul %13, %15, %cst_13 {dimension_numbers = #tpu.dot_dimension_numbers<[1], [0], [0], [1], [0, 0, 1, 1], [], []>} : vector<144x64xbf16>, vector<64x64xbf16>, vector<144x64xf32> -> vector<144x64xf32>
    %c0_14 = arith.constant 0 : index
    %c0_15 = arith.constant 0 : index
    %c0_16 = arith.constant 0 : index
    %17 = vector.load %arg7[%c0_14, %c0_15, %c0_16] : memref<1x1x64xf32, #tpu.memory_space<vmem>>, vector<1x1x64xf32>
    %18 = vector.shape_cast %17 : vector<1x1x64xf32> to vector<1x64xf32>
    %19 = vector.broadcast %18 : vector<1x64xf32> to vector<144x64xf32>
    %20 = arith.addf %16, %19 : vector<144x64xf32>
    %cst_17 = arith.constant 0.00999999977 : f32
    %21 = vector.broadcast %cst_17 : f32 to vector<144x64xf32>
    %22 = arith.cmpf ogt, %20, %21 : vector<144x64xf32>
    %cst_18 = arith.constant 0.00999999977 : f32
    %23 = vector.broadcast %cst_18 : f32 to vector<144x64xf32>
    %24 = arith.subf %20, %23 : vector<144x64xf32>
    %cst_19 = arith.constant -0.00999999977 : f32
    %25 = vector.broadcast %cst_19 : f32 to vector<144x64xf32>
    %26 = arith.cmpf olt, %20, %25 : vector<144x64xf32>
    %cst_20 = arith.constant 0.00999999977 : f32
    %27 = vector.broadcast %cst_20 : f32 to vector<144x64xf32>
    %28 = arith.addf %20, %27 : vector<144x64xf32>
    %cst_21 = arith.constant 0.000000e+00 : f32
    %29 = vector.broadcast %cst_21 : f32 to vector<144x64xf32>
    %30 = arith.select %26, %28, %29 : vector<144x64xi1>, vector<144x64xf32>
    %31 = arith.select %22, %24, %30 : vector<144x64xi1>, vector<144x64xf32>
    %32 = vector.extract_strided_slice %31 {offsets = [0, 0], sizes = [144, 32], strides = [1, 1]} : vector<144x64xf32> to vector<144x32xf32>
    %33 = vector.extract_strided_slice %31 {offsets = [0, 32], sizes = [144, 32], strides = [1, 1]} : vector<144x64xf32> to vector<144x32xf32>
    %34 = arith.mulf %32, %0 : vector<144x32xf32>
    %35 = arith.mulf %33, %1 : vector<144x32xf32>
    %36 = arith.subf %34, %35 : vector<144x32xf32>
    %c0_22 = arith.constant 0 : index
    %c0_23 = arith.constant 0 : index
    %37 = vector.load %arg8[%c0_22, %c0_23] : memref<144x32xf32, #tpu.memory_space<vmem>>, vector<144x32xf32>
    tpu.vector_store %arg8[%c0_22, %c0_23], %36 {strides = array<i32>} : memref<144x32xf32, #tpu.memory_space<vmem>>, vector<144x32xf32>,
    %38 = arith.mulf %32, %1 : vector<144x32xf32>
    %39 = arith.mulf %33, %0 : vector<144x32xf32>
    %40 = arith.addf %38, %39 : vector<144x32xf32>
    %c0_24 = arith.constant 0 : index
    %c0_25 = arith.constant 0 : index
    %41 = vector.load %arg9[%c0_24, %c0_25] : memref<144x32xf32, #tpu.memory_space<vmem>>, vector<144x32xf32>
    tpu.vector_store %arg9[%c0_24, %c0_25], %40 {strides = array<i32>} : memref<144x32xf32, #tpu.memory_space<vmem>>, vector<144x32xf32>,
    return
  }
  func.func @transform_0(%arg0: i32, %arg1: i32) -> (i32, i32) {
    %c0_i32 = arith.constant 0 : i32
    return %arg1, %arg0 : i32, i32
  }
  func.func @transform_1(%arg0: i32, %arg1: i32) -> (i32, i32) {
    %c0_i32 = arith.constant 0 : i32
    return %arg1, %arg0 : i32, i32
  }
  func.func @transform_2(%arg0: i32, %arg1: i32) -> (i32, i32, i32) {
    %c0_i32 = arith.constant 0 : i32
    %c0_i32_0 = arith.constant 0 : i32
    %c0_i32_1 = arith.constant 0 : i32
    return %arg0, %c0_i32, %c0_i32_0 : i32, i32, i32
  }
  func.func @transform_3(%arg0: i32, %arg1: i32) -> (i32, i32, i32) {
    %c0_i32 = arith.constant 0 : i32
    %c0_i32_0 = arith.constant 0 : i32
    %c0_i32_1 = arith.constant 0 : i32
    return %arg0, %c0_i32, %c0_i32_0 : i32, i32, i32
  }
  func.func @transform_4(%arg0: i32, %arg1: i32) -> (i32, i32, i32) {
    %c0_i32 = arith.constant 0 : i32
    %c0_i32_0 = arith.constant 0 : i32
    %c0_i32_1 = arith.constant 0 : i32
    return %arg0, %c0_i32, %c0_i32_0 : i32, i32, i32
  }
  func.func @transform_5(%arg0: i32, %arg1: i32) -> (i32, i32, i32) {
    %c0_i32 = arith.constant 0 : i32
    %c0_i32_0 = arith.constant 0 : i32
    %c0_i32_1 = arith.constant 0 : i32
    return %arg0, %c0_i32, %c0_i32_0 : i32, i32, i32
  }
  func.func @transform_6(%arg0: i32, %arg1: i32) -> (i32, i32) {
    %c0_i32 = arith.constant 0 : i32
    return %arg1, %arg0 : i32, i32
  }
  func.func @transform_7(%arg0: i32, %arg1: i32) -> (i32, i32) {
    %c0_i32 = arith.constant 0 : i32
    return %arg1, %arg0 : i32, i32
  }
}

</mosaic_0001>

<bundles_post_ra>
// kernel: squeeze.13
= control target key start
LH: loop header
LB: loop body
LE: loop exit
PB: predicated region body
PF: predicated region fallthrough
CT: control target
= control target key end

     0   :  { %vm7_vm0 = vcmask 64512   ;;  %s37_s8 = smov 8   ;;  %s38_s9 = smov 16   ;;  %vm13_vm1 = vcmask 261312   ;;  %vm19_vm2 = vcmask 195712   ;;  %vm25_vm3 = vcmask 130112   ;;  %s55_s0 = inlined_call_operand.vmem [shape: f32[1,4,8], index: 0, kind: input, shape index: {}]   ;;  %s56_s1 = inlined_call_operand.vmem [shape: f32[32], index: 1, kind: output, shape index: {}]  }
   0x1   :  { %v4_v0 = vld [vmem:[%s55_s0] sm:$0xf]  ;;  %s36_s0 = smov 24  }
   0x2   :  { %5 = vst [vmem:[#allocation1] sm:$0xf] %v4_v0 }
   0x9   :  { %v10_v1 = vld [vmem:[#allocation1 + $0x3] sm:$0x1]   ;;  %v22_v2 = vld [vmem:[#allocation1 + $0x1] sm:$0x1]   ;;  %v6_v3 = vld [vmem:[#allocation1] sm:$0x1]  }
   0xa   :  { %11 = vrot.lane.b32.xlu0 %v10_v1, %s36_s0  ;;  %23 = vrot.lane.b32.xlu1 %v22_v2, %s37_s8  ;;  %v16_v4 = vld [vmem:[#allocation1 + $0x2] sm:$0x1]   ;;  %8 = vst.msk [vmem:[#allocation0] sm:$0x1] %vm7_vm0, %v6_v3  }
   0xe   :  { %17 = vrot.lane.b32.xlu0 %v16_v4, %s38_s9 }
  0x7c   :  { %v12_v5 = vpop.permute.xlu0 %11   ;;  %v24_v6 = vpop.permute.xlu1 %23  }
  0x7d   :  { %14 = vst.msk [vmem:[#allocation0] sm:$0x1] %vm13_vm1, %v12_v5  }
  0x80   :  { %v18_v7 = vpop.permute.xlu0 %17  }
  0x81   :  { %20 = vst.msk [vmem:[#allocation0] sm:$0x1] %vm19_vm2, %v18_v7  }
  0x82   :  { %26 = vst.msk [vmem:[#allocation0] sm:$0x1] %vm25_vm3, %v24_v6  }
  0x89   :  { %v30_v8 = vld [vmem:[#allocation0] sm:$0x1] }
  0x8a   :  { %32 = vst [vmem:[%s56_s1] sm:$0x1] %v30_v8 }

// kernel: reverse.1
= control target key start
LH: loop header
LB: loop body
LE: loop exit
PB: predicated region body
PF: predicated region fallthrough
CT: control target
= control target key end

     0   :  { %s344_s0 = inlined_call_operand.vmem [shape: f32[2,32,16,7], index: 0, kind: input, shape index: {}]   ;;  %s345_s1 = inlined_call_operand.vmem [shape: f32[2,32,16,7], index: 1, kind: output, shape index: {}]  }
   0x1   :  { %v112_v0 = vld [vmem:[%s344_s0 + $0x60] sm:$0xff]  ;;  %v113_v1 = vld [vmem:[%s344_s0 + $0xd0] sm:$0xff]  ;;  %v138_v14 = vld [vmem:[%s344_s0 + $0x68] sm:$0xff] }
   0x2   :  { %v115_v2 = vld [vmem:[%s344_s0 + $0x50] sm:$0xff]  ;;  %4 = vst [vmem:[%s345_s1] sm:$0xff] %v112_v0  ;;  %114 = vst [vmem:[%s345_s1 + $0x70] sm:$0xff] %v113_v1  ;;  %v117_v3 = vld [vmem:[%s344_s0 + $0xc0] sm:$0xff] }
   0x3   :  { %116 = vst [vmem:[%s345_s1 + $0x10] sm:$0xff] %v115_v2  ;;  %v119_v4 = vld [vmem:[%s344_s0 + $0x40] sm:$0xff]  ;;  %v121_v5 = vld [vmem:[%s344_s0 + $0xb0] sm:$0xff]  ;;  %118 = vst [vmem:[%s345_s1 + $0x80] sm:$0xff] %v117_v3 }
   0x4   :  { %120 = vst [vmem:[%s345_s1 + $0x20] sm:$0xff] %v119_v4  ;;  %122 = vst [vmem:[%s345_s1 + $0x90] sm:$0xff] %v121_v5  ;;  %v123_v6 = vld [vmem:[%s344_s0 + $0x30] sm:$0xff]  ;;  %v125_v7 = vld [vmem:[%s344_s0 + $0xa0] sm:$0xff] }
   0x5   :  { %v127_v8 = vld [vmem:[%s344_s0 + $0x20] sm:$0xff]  ;;  %124 = vst [vmem:[%s345_s1 + $0x30] sm:$0xff] %v123_v6  ;;  %126 = vst [vmem:[%s345_s1 + $0xa0] sm:$0xff] %v125_v7  ;;  %v129_v9 = vld [vmem:[%s344_s0 + $0x90] sm:$0xff] }
   0x6   :  { %128 = vst [vmem:[%s345_s1 + $0x40] sm:$0xff] %v127_v8  ;;  %v131_v10 = vld [vmem:[%s344_s0 + $0x10] sm:$0xff]  ;;  %v133_v11 = vld [vmem:[%s344_s0 + $0x80] sm:$0xff]  ;;  %130 = vst [vmem:[%s345_s1 + $0xb0] sm:$0xff] %v129_v9 }
   0x7   :  { %132 = vst [vmem:[%s345_s1 + $0x50] sm:$0xff] %v131_v10  ;;  %134 = vst [vmem:[%s345_s1 + $0xc0] sm:$0xff] %v133_v11  ;;  %v49_v12 = vld [vmem:[%s344_s0] sm:$0xff]  ;;  %v136_v13 = vld [vmem:[%s344_s0 + $0x70] sm:$0xff] }
   0x8   :  { %135 = vst [vmem:[%s345_s1 + $0x60] sm:$0xff] %v49_v12  ;;  %137 = vst [vmem:[%s345_s1 + $0xd0] sm:$0xff] %v136_v13  ;;  %v140_v15 = vld [vmem:[%s344_s0 + $0xd8] sm:$0xff]  ;;  %v144_v17 = vld [vmem:[%s344_s0 + $0xc8] sm:$0xff] }
   0x9   :  { %139 = vst [vmem:[%s345_s1 + $0x8] sm:$0xff] %v138_v14  ;;  %v142_v16 = vld [vmem:[%s344_s0 + $0x58] sm:$0xff]  ;;  %141 = vst [vmem:[%s345_s1 + $0x78] sm:$0xff] %v140_v15  ;;  %v146_v18 = vld [vmem:[%s344_s0 + $0x48] sm:$0xff] }
   0xa   :  { %143 = vst [vmem:[%s345_s1 + $0x18] sm:$0xff] %v142_v16  ;;  %145 = vst [vmem:[%s345_s1 + $0x88] sm:$0xff] %v144_v17  ;;  %v148_v19 = vld [vmem:[%s344_s0 + $0xb8] sm:$0xff]  ;;  %v152_v21 = vld [vmem:[%s344_s0 + $0xa8] sm:$0xff] }
   0xb   :  { %v150_v20 = vld [vmem:[%s344_s0 + $0x38] sm:$0xff]  ;;  %147 = vst [vmem:[%s345_s1 + $0x28] sm:$0xff] %v146_v18  ;;  %149 = vst [vmem:[%s345_s1 + $0x98] sm:$0xff] %v148_v19  ;;  %v154_v22 = vld [vmem:[%s344_s0 + $0x28] sm:$0xff] }
   0xc   :  { %151 = vst [vmem:[%s345_s1 + $0x38] sm:$0xff] %v150_v20  ;;  %v156_v23 = vld [vmem:[%s344_s0 + $0x98] sm:$0xff]  ;;  %153 = vst [vmem:[%s345_s1 + $0xa8] sm:$0xff] %v152_v21  ;;  %v160_v25 = vld [vmem:[%s344_s0 + $0x88] sm:$0xff] }
   0xd   :  { %155 = vst [vmem:[%s345_s1 + $0x48] sm:$0xff] %v154_v22  ;;  %157 = vst [vmem:[%s345_s1 + $0xb8] sm:$0xff] %v156_v23  ;;  %v158_v24 = vld [vmem:[%s344_s0 + $0x18] sm:$0xff]  ;;  %v162_v26 = vld [vmem:[%s344_s0 + $0x8] sm:$0xff] }
   0xe   :  { %159 = vst [vmem:[%s345_s1 + $0x58] sm:$0xff] %v158_v24  ;;  %161 = vst [vmem:[%s345_s1 + $0xc8] sm:$0xff] %v160_v25  ;;  %v164_v27 = vld [vmem:[%s344_s0 + $0x78] sm:$0xff] }
   0xf   :  { %163 = vst [vmem:[%s345_s1 + $0x68] sm:$0xff] %v162_v26  ;;  %165 = vst [vmem:[%s345_s1 + $0xd8] sm:$0xff] %v164_v27 }

// kernel: afno2d_channelfirst.1
= control target key start
LH: loop header
LB: loop body
LE: loop exit
PB: predicated region body
PF: predicated region fallthrough
CT: control target
= control target key end

     0   :  { %s1883_s24 = smov 0   ;;  %s1885_s25 = smov 0   ;;  %s2602_s0 = inlined_call_operand.vmem [shape: f32[288,32], index: 0, kind: input, shape index: {}, may-alias: {0,6}]   ;;  %s2603_s1 = inlined_call_operand.vmem [shape: f32[288,32], index: 1, kind: input, shape index: {}, may-alias: {1,7}]   ;;  %s2604_s2 = inlined_call_operand.vmem [shape: bf16[1,64,64], index: 2, kind: input, shape index: {}]   ;;  %s2605_s3 = inlined_call_operand.vmem [shape: f32[1,1,64], index: 3, kind: input, shape index: {}]   ;;  %s2606_s4 = inlined_call_operand.vmem [shape: bf16[1,64,64], index: 4, kind: input, shape index: {}]   ;;  %s2607_s5 = inlined_call_operand.vmem [shape: f32[1,1,64], index: 5, kind: input, shape index: {}]   ;;  %s2608_s6 = inlined_call_operand.vmem [shape: f32[288,32], index: 6, kind: output, shape index: {0}, may-alias: {0,6}]   ;;  %s2609_s7 = inlined_call_operand.vmem [shape: f32[288,32], index: 7, kind: output, shape index: {1}, may-alias: {1,7}]  }
   0x1   :  { %s1887_s26 = smov 0  }
   0x2 LB: > { %s27_s27 = sadd.s32 1, %s1833_s25  ;;  %p1610_p0 = scmp.ge.s32.totalorder %s1837_s26, 1  ;;  %s1837_s26 = sphi %s1887_s26, %s18_s26   ;;  %s1833_s25 = sphi %s1885_s25, %s2629_s25   ;;  %s1829_s24 = sphi %s1883_s24, %s2628_s24  }
   0x3   : > { %p28_p1 = scmp.ge.s32.totalorder %s27_s27, 2  ;;  %p314_p2 = scmp.lt.s32.totalorder %s1837_s26, 3 }
   0x5   : > { %s2631_s27 = smov (%p28_p1, %s27_s27), 0  ;;  %p315_p3 = pnand %p1610_p0, %p314_p2 }
   0x7   : > { %318 = sbr.rel (%p315_p3) target bundleno = 772 (0x304), region = 44 }
   0xe   : > { %s384_s28 = smul.u32 18, %s1829_s24  ;;  %v1805_v0 = vld [vmem:[%s2604_s2] sm:$0xff]   ;;  %v2610_v1 = vmov 0.0   ;;  %v1806_v2 = vld [vmem:[%s2604_s2 + $0x8] sm:$0xff]   ;;  %vm1840_vm0 = vmmov 0   ;;  %v1807_v3 = vld [vmem:[%s2604_s2 + $0x10] sm:$0xff]  }
   0xf   : > { %1689 = vmatprep.subr.bf16.mxu0 %v2610_v1  ;;  %1733 = vmatprep.subr.bf16.mxu1 %v2610_v1  ;;  %s1841_s16 = smov 32   ;;  %v1808_v8 = vld [vmem:[%s2604_s2 + $0x18] sm:$0xff]   ;;  %v1809_v35 = vld [vmem:[%s2606_s4] sm:$0xff]   ;;  %v1810_v38 = vld [vmem:[%s2606_s4 + $0x8] sm:$0xff]   ;;  %vm545_vm1 = vcmask 261120   ;;  %vm612_vm2 = vcmask 523264  }
  0x10   : > { %p385_p4 = scmp.lt.s32.totalorder %s384_s28, 35  ;;  %1690 = vmatpush3.bf16.msra.mxu0 %v1805_v0  ;;  %1697 = vmatprep.mubr.msk.bf16.mxu0 %vm1840_vm0, %v2610_v1 }
  0x11   : > { %1691 = vmatprep.subr.bf16.mxu0 %v2610_v1  ;;  %1741 = vmatprep.mubr.msk.bf16.mxu1 %vm1840_vm0, %v2610_v1 }
  0x12   : > { %s2633_s28 = smov (!%p385_p4, %s384_s28), 35  ;;  %1734 = vmatpush3.bf16.msra.mxu1 %v1809_v35 }
  0x13   : > { %s1914_s10 = sshll.u32 %s2633_s28, 3  ;;  %1735 = vmatprep.subr.bf16.mxu1 %v2610_v1 }
  0x14   : > { %1692 = vmatpush3.bf16.msra.mxu0 %v1806_v2  ;;  %s1923_s15 = scalar_lea.vmem %s2603_s1, %s1914_s10  ;;  %s2014_s21 = scalar_lea.vmem %s2602_s0, %s1914_s10 }
  0x15   : > { %1693 = vmatprep.subr.bf16.mxu0 %v2610_v1  ;;  %v455_v4 = vld [vmem:[%s1923_s15] sm:$0xff]  ;;  %v1928_v5 = vld [vmem:[%s1923_s15 + $0x10] sm:$0xff]  ;;  %v456_v6 = vld [vmem:[%s1923_s15 + $0x8] sm:$0xff]  ;;  %s2443_s19 = scalar_lea.vmem %s2608_s6, %s1914_s10  ;;  %s2455_s22 = scalar_lea.vmem %s2609_s7, %s1914_s10 }
  0x16   : > { %491 = vrot.lane.b32.xlu0 %v455_v4, %s1841_s16  ;;  %495 = vrot.lane.b32.xlu1 %v1928_v5, %s1841_s16  ;;  %v1935_v7 = vld [vmem:[%s1923_s15 + $0x18] sm:$0xff]  ;;  %v1945_v9 = vld [vmem:[%s1923_s15 + $0x28] sm:$0xff] }
  0x17   : > { %v1948_v10 = vld [vmem:[%s1923_s15 + $0x20] sm:$0xff]  ;;  %v1955_v11 = vld [vmem:[%s1923_s15 + $0x38] sm:$0xff]  ;;  %v1958_v12 = vld [vmem:[%s1923_s15 + $0x30] sm:$0xff]  ;;  %1736 = vmatpush3.bf16.msra.mxu1 %v1810_v38 }
  0x18   : > { %1694 = vmatpush3.bf16.msra.mxu0 %v1807_v3  ;;  %v1965_v13 = vld [vmem:[%s1923_s15 + $0x48] sm:$0xff]  ;;  %v1968_v14 = vld [vmem:[%s1923_s15 + $0x40] sm:$0xff]  ;;  %v1975_v15 = vld [vmem:[%s1923_s15 + $0x58] sm:$0xff]  ;;  %1737 = vmatprep.subr.bf16.mxu1 %v2610_v1 }
  0x19   : > { %1695 = vmatprep.subr.bf16.mxu0 %v2610_v1  ;;  %v1978_v16 = vld [vmem:[%s1923_s15 + $0x50] sm:$0xff]  ;;  %v1985_v17 = vld [vmem:[%s1923_s15 + $0x68] sm:$0xff]  ;;  %v1988_v18 = vld [vmem:[%s1923_s15 + $0x60] sm:$0xff] }
  0x1a   : > { %493 = vrot.lane.b32.xlu0 %v456_v6, %s1841_s16  ;;  %497 = vrot.lane.b32.xlu1 %v1935_v7, %s1841_s16  ;;  %v1995_v19 = vld [vmem:[%s1923_s15 + $0x78] sm:$0xff]  ;;  %v1998_v20 = vld [vmem:[%s1923_s15 + $0x70] sm:$0xff] }
  0x1b   : > { %2617 = vst [vmem:[#allocation2_spill] sm:$0xff] %v1995_v19  ;;  %v2005_v21 = vld [vmem:[%s1923_s15 + $0x88] sm:$0xff]  ;;  %v2008_v22 = vld [vmem:[%s1923_s15 + $0x80] sm:$0xff]  ;;  %v2031_v25 = vld [vmem:[%s2014_s21 + $0x10] sm:$0xff] }
  0x1c   : > { %1696 = vmatpush3.bf16.msra.mxu0 %v1808_v8  ;;  %2618 = vst [vmem:[#allocation3_spill] sm:$0xff] %v2005_v21  ;;  %2619 = vst [vmem:[#allocation4_spill] sm:$0xff] %v2008_v22  ;;  %v2021_v23 = vld [vmem:[%s2014_s21] sm:$0xff]  ;;  %v2024_v24 = vld [vmem:[%s2014_s21 + $0x8] sm:$0xff] }
  0x1d   : > { %v2034_v26 = vld [vmem:[%s2014_s21 + $0x18] sm:$0xff]  ;;  %v2041_v27 = vld [vmem:[%s2014_s21 + $0x28] sm:$0xff]  ;;  %v2044_v28 = vld [vmem:[%s2014_s21 + $0x20] sm:$0xff] }
  0x1e   : > { %501 = vrot.lane.b32.xlu1 %v1945_v9, %s1841_s16  ;;  %499 = vrot.lane.b32.xlu0 %v1948_v10, %s1841_s16  ;;  %v2051_v29 = vld [vmem:[%s2014_s21 + $0x38] sm:$0xff]  ;;  %v2054_v30 = vld [vmem:[%s2014_s21 + $0x30] sm:$0xff] }
  0x1f   : > { %v2061_v31 = vld [vmem:[%s2014_s21 + $0x48] sm:$0xff]  ;;  %v2064_v32 = vld [vmem:[%s2014_s21 + $0x40] sm:$0xff]  ;;  %v2071_v33 = vld [vmem:[%s2014_s21 + $0x58] sm:$0xff] }
  0x20   : > { %v2074_v34 = vld [vmem:[%s2014_s21 + $0x50] sm:$0xff]  ;;  %v2084_v36 = vld [vmem:[%s2014_s21 + $0x60] sm:$0xff]  ;;  %v2087_v37 = vld [vmem:[%s2014_s21 + $0x68] sm:$0xff] }
  0x21   : > { %v2098_v39 = vld [vmem:[%s2014_s21 + $0x70] sm:$0xff]  ;;  %v2101_v40 = vld [vmem:[%s2014_s21 + $0x78] sm:$0xff]  ;;  %v2109_v41 = vld [vmem:[%s2014_s21 + $0x80] sm:$0xff] }
  0x22   : > { %505 = vrot.lane.b32.xlu1 %v1955_v11, %s1841_s16  ;;  %503 = vrot.lane.b32.xlu0 %v1958_v12, %s1841_s16  ;;  %2620 = vst [vmem:[#allocation5_spill] sm:$0xff] %v2109_v41  ;;  %v2112_v42 = vld [vmem:[%s2014_s21 + $0x88] sm:$0xff] }
  0x23   : > { %2621 = vst [vmem:[#allocation6_spill] sm:$0xff] %v2112_v42 }
  0x26   : > { %509 = vrot.lane.b32.xlu1 %v1965_v13, %s1841_s16  ;;  %507 = vrot.lane.b32.xlu0 %v1968_v14, %s1841_s16 }
  0x2a   : > { %513 = vrot.lane.b32.xlu1 %v1975_v15, %s1841_s16  ;;  %511 = vrot.lane.b32.xlu0 %v1978_v16, %s1841_s16 }
  0x2e   : > { %517 = vrot.lane.b32.xlu1 %v1985_v17, %s1841_s16  ;;  %515 = vrot.lane.b32.xlu0 %v1988_v18, %s1841_s16 }
  0x32   : > { %521 = vrot.lane.b32.xlu1 %v1995_v19, %s1841_s16  ;;  %519 = vrot.lane.b32.xlu0 %v1998_v20, %s1841_s16 }
  0x36   : > { %525 = vrot.lane.b32.xlu1 %v2005_v21, %s1841_s16  ;;  %523 = vrot.lane.b32.xlu0 %v2008_v22, %s1841_s16 }
  0x3a   : > { %1231 = vrot.lane.b32.xlu0 %v2021_v23, %s1841_s16  ;;  %1233 = vrot.lane.b32.xlu1 %v2024_v24, %s1841_s16 }
  0x3e   : > { %1235 = vrot.lane.b32.xlu0 %v2031_v25, %s1841_s16  ;;  %1237 = vrot.lane.b32.xlu1 %v2034_v26, %s1841_s16 }
  0x42   : > { %1239 = vrot.lane.b32.xlu0 %v2044_v28, %s1841_s16  ;;  %1241 = vrot.lane.b32.xlu1 %v2041_v27, %s1841_s16 }
  0x46   : > { %1243 = vrot.lane.b32.xlu0 %v2054_v30, %s1841_s16  ;;  %1245 = vrot.lane.b32.xlu1 %v2051_v29, %s1841_s16 }
  0x4a   : > { %1247 = vrot.lane.b32.xlu0 %v2064_v32, %s1841_s16  ;;  %1249 = vrot.lane.b32.xlu1 %v2061_v31, %s1841_s16 }
  0x4e   : > { %1251 = vrot.lane.b32.xlu0 %v2074_v34, %s1841_s16  ;;  %1253 = vrot.lane.b32.xlu1 %v2071_v33, %s1841_s16 }
  0x52   : > { %1255 = vrot.lane.b32.xlu0 %v2084_v36, %s1841_s16  ;;  %1257 = vrot.lane.b32.xlu1 %v2087_v37, %s1841_s16 }
  0x56   : > { %1259 = vrot.lane.b32.xlu0 %v2098_v39, %s1841_s16  ;;  %1261 = vrot.lane.b32.xlu1 %v2101_v40, %s1841_s16 }
  0x5a   : > { %1263 = vrot.lane.b32.xlu0 %v2109_v41, %s1841_s16  ;;  %1265 = vrot.lane.b32.xlu1 %v2112_v42, %s1841_s16  ;;  %s1842_s16 = smov 96  }
  0x88   : > { %v2118_v43 = vpop.permute.xlu0 %491  ;;  %v2120_v44 = vpop.permute.xlu1 %495 }
  0x89   : > { %v546_v46 = vsel %vm545_vm1, %v2021_v23, %v2118_v43  ;;  %v548_v50 = vsel %vm545_vm1, %v2031_v25, %v2120_v44 }
  0x8c   : > { %v2122_v45 = vpop.permute.xlu0 %493  ;;  %v2130_v49 = vpop.permute.xlu1 %497 }
  0x8d   : > { %v547_v47 = vsel %vm545_vm1, %v2024_v24, %v2122_v45  ;;  %v549_v51 = vsel %vm545_vm1, %v2034_v26, %v2130_v49 }
  0x8e   : > { %v564_v48 = vpack.c.bf16 %v547_v47, %v546_v46  ;;  %v565_v52 = vpack.c.bf16 %v549_v51, %v548_v50 }
  0x90   : > { %1698 = vmatmul.mubr.msk.bf16.vlgmr.msra.gmra.mrb[0].mxu0 %vm612_vm2, %v564_v48  ;;  %v2141_v53 = vpop.permute.xlu1 %501  ;;  %v2143_v54 = vpop.permute.xlu0 %499 }
  0x91   : > { %1701 = vmatprep.mubr.msk.bf16.mxu0 %vm1840_vm0, %v2610_v1  ;;  %v551_v55 = vsel %vm545_vm1, %v2041_v27, %v2141_v53  ;;  %v550_v56 = vsel %vm545_vm1, %v2044_v28, %v2143_v54 }
  0x92   : > { %v566_v57 = vpack.c.bf16 %v551_v55, %v550_v56 }
  0x94   : > { %v2154_v58 = vpop.permute.xlu1 %505  ;;  %v2156_v59 = vpop.permute.xlu0 %503 }
  0x95   : > { %v553_v60 = vsel %vm545_vm1, %v2051_v29, %v2154_v58  ;;  %v552_v61 = vsel %vm545_vm1, %v2054_v30, %v2156_v59 }
  0x96   : > { %v567_v62 = vpack.c.bf16 %v553_v60, %v552_v61 }
  0x98   : > { %1702 = vmatmul.mubr.msk.bf16.gmra.mrb[4].mxu0 %vm612_vm2, %v565_v52  ;;  %v2167_v63 = vpop.permute.xlu1 %509  ;;  %v2169_v0 = vpop.permute.xlu0 %507 }
  0x99   : > { %1705 = vmatprep.mubr.msk.bf16.mxu0 %vm1840_vm0, %v2610_v1  ;;  %v555_v2 = vsel %vm545_vm1, %v2061_v31, %v2167_v63  ;;  %v554_v3 = vsel %vm545_vm1, %v2064_v32, %v2169_v0 }
  0x9a   : > { %v568_v4 = vpack.c.bf16 %v555_v2, %v554_v3 }
  0x9c   : > { %v2180_v6 = vpop.permute.xlu1 %513  ;;  %v2182_v8 = vpop.permute.xlu0 %511 }
  0x9d   : > { %v557_v35 = vsel %vm545_vm1, %v2071_v33, %v2180_v6  ;;  %v556_v38 = vsel %vm545_vm1, %v2074_v34, %v2182_v8 }
  0x9e   : > { %v569_v46 = vpack.c.bf16 %v557_v35, %v556_v38  ;;  %v1811_v38 = vld [vmem:[%s2606_s4 + $0x10] sm:$0xff]  }
  0x9f   : > { %1738 = vmatpush3.bf16.msra.mxu1 %v1811_v38 }
  0xa0   : > { %1706 = vmatmul.mubr.msk.bf16.gmra.mrb[8].mxu0 %vm612_vm2, %v566_v57  ;;  %v2193_v47 = vpop.permute.xlu1 %517  ;;  %v2195_v48 = vpop.permute.xlu0 %515  ;;  %1739 = vmatprep.subr.bf16.mxu1 %v2610_v1 }
  0xa1   : > { %1709 = vmatprep.mubr.msk.bf16.mxu0 %vm1840_vm0, %v2610_v1  ;;  %v559_v50 = vsel %vm545_vm1, %v2087_v37, %v2193_v47  ;;  %v558_v51 = vsel %vm545_vm1, %v2084_v36, %v2195_v48 }
  0xa2   : > { %v570_v52 = vpack.c.bf16 %v559_v50, %v558_v51  ;;  %v2243_v50 = vld [vmem:[%s2605_s3] ss:$0 sm:$0xff] }
  0xa4   : > { %v2206_v55 = vpop.permute.xlu1 %521  ;;  %v2208_v56 = vpop.permute.xlu0 %519 }
  0xa5   : > { %v561_v57 = vsel %vm545_vm1, %v2101_v40, %v2206_v55  ;;  %v560_v60 = vsel %vm545_vm1, %v2098_v39, %v2208_v56 }
  0xa6   : > { %v571_v61 = vpack.c.bf16 %v561_v57, %v560_v60 }
  0xa8   : > { %1710 = vmatmul.mubr.msk.bf16.gmra.mrb[12].mxu0 %vm612_vm2, %v567_v62  ;;  %v2219_v62 = vpop.permute.xlu1 %525  ;;  %v2221_v2 = vpop.permute.xlu0 %523 }
  0xa9   : > { %1713 = vmatprep.mubr.msk.bf16.mxu0 %vm1840_vm0, %v2610_v1  ;;  %v563_v3 = vsel %vm545_vm1, %v2112_v42, %v2219_v62  ;;  %v2622_v42 = vmov 0.0  }
  0xb0   : > { %1714 = vmatmul.mubr.msk.bf16.gmra.mrb[16].mxu0 %vm612_vm2, %v568_v4  ;;  %v562_v4 = vsel %vm545_vm1, %v2109_v41, %v2221_v2 }
  0xb1   : > { %1717 = vmatprep.mubr.msk.bf16.mxu0 %vm1840_vm0, %v2610_v1  ;;  %v572_v35 = vpack.c.bf16 %v563_v3, %v562_v4 }
  0xb8   : > { %1718 = vmatmul.mubr.msk.bf16.gmra.mrb[20].mxu0 %vm612_vm2, %v569_v46  ;;  %v1812_v46 = vld [vmem:[%s2606_s4 + $0x18] sm:$0xff]  }
  0xb9   : > { %1721 = vmatprep.mubr.msk.bf16.mxu0 %vm1840_vm0, %v2610_v1  ;;  %1740 = vmatpush3.bf16.msra.mxu1 %v1812_v46 }
  0xc0   : > { %1722 = vmatmul.mubr.msk.bf16.gmra.mrb[24].mxu0 %vm612_vm2, %v570_v52 }
  0xc1   : > { %1725 = vmatprep.mubr.msk.bf16.mxu0 %vm1840_vm0, %v2610_v1 }
  0xc8   : > { %1726 = vmatmul.mubr.msk.bf16.gmra.mrb[28].mxu0 %vm612_vm2, %v571_v61 }
  0xc9   : > { %1729 = vmatprep.mubr.msk.bf16.mxu0 %vm1840_vm0, %v2610_v1 }
  0xd0   : > { %1730 = vmatmul.mubr.msk.bf16.gmra.mrb[32].mxu0 %vm612_vm2, %v572_v35 }
 0x163   : > { %v674_v51 = vpop.f32.mrb[0].mxu0 }
 0x164   : > { %v675_v52 = vadd.f32 %v2243_v50, %v674_v51  ;;  %v1699_v57 = vpop.f32.mrb[1].mxu0 }
 0x165   : > { %v677_v60 = vpop.f32.mrb[2].mxu0 }
 0x166   : > { %v678_v61 = vadd.f32 %v2243_v50, %v677_v60  ;;  %v1700_v3 = vpop.f32.mrb[3].mxu0  ;;  %v745_v4 = vmax.f32 %v675_v52, 0.0 }
 0x168   : > { %v746_v35 = vmax.f32 %v678_v61, 0.0 }
 0x16a   : > { %v763_v38 = vpack.c.bf16 %v746_v35, %v745_v4 }
 0x16b   : > { %v682_v1 = vpop.f32.mrb[4].mxu0 }
 0x16c   : > { %v683_v21 = vadd.f32 %v2243_v50, %v682_v1  ;;  %v1703_v46 = vpop.f32.mrb[5].mxu0  ;;  %1742 = vmatmul.mubr.msk.bf16.vlgmr.msra.gmra.mrb[0].mxu1 %vm612_vm2, %v763_v38 }
 0x16d   : > { %v685_v22 = vpop.f32.mrb[6].mxu0  ;;  %1745 = vmatprep.mubr.msk.bf16.mxu1 %vm1840_vm0, %v2622_v42 }
 0x16e   : > { %v686_v51 = vadd.f32 %v2243_v50, %v685_v22  ;;  %v1704_v57 = vpop.f32.mrb[7].mxu0  ;;  %v747_v41 = vmax.f32 %v683_v21, 0.0 }
 0x170   : > { %v748_v19 = vmax.f32 %v686_v51, 0.0 }
 0x172   : > { %v764_v60 = vpack.c.bf16 %v748_v19, %v747_v41 }
 0x173   : > { %v690_v3 = vpop.f32.mrb[8].mxu0 }
 0x174   : > { %v691_v52 = vadd.f32 %v2243_v50, %v690_v3  ;;  %v1707_v61 = vpop.f32.mrb[9].mxu0  ;;  %1746 = vmatmul.mubr.msk.bf16.gmra.mrb[4].mxu1 %vm612_vm2, %v764_v60 }
 0x175   : > { %v693_v1 = vpop.f32.mrb[10].mxu0  ;;  %1749 = vmatprep.mubr.msk.bf16.mxu1 %vm1840_vm0, %v2622_v42 }
 0x176   : > { %v694_v4 = vadd.f32 %v2243_v50, %v693_v1  ;;  %v1708_v35 = vpop.f32.mrb[11].mxu0  ;;  %v749_v38 = vmax.f32 %v691_v52, 0.0 }
 0x178   : > { %v750_v46 = vmax.f32 %v694_v4, 0.0 }
 0x17a   : > { %v765_v22 = vpack.c.bf16 %v750_v46, %v749_v38 }
 0x17b   : > { %v698_v57 = vpop.f32.mrb[12].mxu0 }
 0x17c   : > { %v699_v21 = vadd.f32 %v2243_v50, %v698_v57  ;;  %v1711_v19 = vpop.f32.mrb[13].mxu0  ;;  %1750 = vmatmul.mubr.msk.bf16.gmra.mrb[8].mxu1 %vm612_vm2, %v765_v22 }
 0x17d   : > { %v701_v41 = vpop.f32.mrb[14].mxu0  ;;  %1753 = vmatprep.mubr.msk.bf16.mxu1 %vm1840_vm0, %v2622_v42 }
 0x17e   : > { %v702_v51 = vadd.f32 %v2243_v50, %v701_v41  ;;  %v1712_v60 = vpop.f32.mrb[15].mxu0  ;;  %v751_v3 = vmax.f32 %v699_v21, 0.0 }
 0x180   : > { %v752_v61 = vmax.f32 %v702_v51, 0.0 }
 0x182   : > { %v766_v1 = vpack.c.bf16 %v752_v61, %v751_v3 }
 0x183   : > { %v706_v35 = vpop.f32.mrb[16].mxu0 }
 0x184   : > { %v707_v52 = vadd.f32 %v2243_v50, %v706_v35  ;;  %v1715_v4 = vpop.f32.mrb[17].mxu0  ;;  %1754 = vmatmul.mubr.msk.bf16.gmra.mrb[12].mxu1 %vm612_vm2, %v766_v1 }
 0x185   : > { %v709_v38 = vpop.f32.mrb[18].mxu0  ;;  %1757 = vmatprep.mubr.msk.bf16.mxu1 %vm1840_vm0, %v2622_v42 }
 0x186   : > { %v710_v46 = vadd.f32 %v2243_v50, %v709_v38  ;;  %v1716_v22 = vpop.f32.mrb[19].mxu0  ;;  %v753_v57 = vmax.f32 %v707_v52, 0.0 }
 0x188   : > { %v754_v19 = vmax.f32 %v710_v46, 0.0 }
 0x18a   : > { %v767_v41 = vpack.c.bf16 %v754_v19, %v753_v57 }
 0x18b   : > { %v714_v60 = vpop.f32.mrb[20].mxu0 }
 0x18c   : > { %v715_v21 = vadd.f32 %v2243_v50, %v714_v60  ;;  %v1719_v51 = vpop.f32.mrb[21].mxu0  ;;  %1758 = vmatmul.mubr.msk.bf16.gmra.mrb[16].mxu1 %vm612_vm2, %v767_v41 }
 0x18d   : > { %v717_v3 = vpop.f32.mrb[22].mxu0  ;;  %1761 = vmatprep.mubr.msk.bf16.mxu1 %vm1840_vm0, %v2622_v42 }
 0x18e   : > { %v718_v61 = vadd.f32 %v2243_v50, %v717_v3  ;;  %v1720_v1 = vpop.f32.mrb[23].mxu0  ;;  %v755_v35 = vmax.f32 %v715_v21, 0.0 }
 0x190   : > { %v756_v4 = vmax.f32 %v718_v61, 0.0 }
 0x192   : > { %v768_v38 = vpack.c.bf16 %v756_v4, %v755_v35 }
 0x193   : > { %v722_v22 = vpop.f32.mrb[24].mxu0 }
 0x194   : > { %v723_v52 = vadd.f32 %v2243_v50, %v722_v22  ;;  %v1723_v46 = vpop.f32.mrb[25].mxu0  ;;  %1762 = vmatmul.mubr.msk.bf16.gmra.mrb[20].mxu1 %vm612_vm2, %v768_v38 }
 0x195   : > { %v725_v57 = vpop.f32.mrb[26].mxu0  ;;  %1765 = vmatprep.mubr.msk.bf16.mxu1 %vm1840_vm0, %v2622_v42 }
 0x196   : > { %v726_v19 = vadd.f32 %v2243_v50, %v725_v57  ;;  %v1724_v41 = vpop.f32.mrb[27].mxu0  ;;  %v757_v60 = vmax.f32 %v723_v52, 0.0 }
 0x198   : > { %v758_v51 = vmax.f32 %v726_v19, 0.0 }
 0x19a   : > { %v769_v3 = vpack.c.bf16 %v758_v51, %v757_v60 }
 0x19b   : > { %v730_v1 = vpop.f32.mrb[28].mxu0 }
 0x19c   : > { %v731_v21 = vadd.f32 %v2243_v50, %v730_v1  ;;  %v1727_v61 = vpop.f32.mrb[29].mxu0  ;;  %1766 = vmatmul.mubr.msk.bf16.gmra.mrb[24].mxu1 %vm612_vm2, %v769_v3 }
 0x19d   : > { %v733_v35 = vpop.f32.mrb[30].mxu0  ;;  %1769 = vmatprep.mubr.msk.bf16.mxu1 %vm1840_vm0, %v2622_v42 }
 0x19e   : > { %v734_v4 = vadd.f32 %v2243_v50, %v733_v35  ;;  %v1728_v38 = vpop.f32.mrb[31].mxu0  ;;  %v759_v22 = vmax.f32 %v731_v21, 0.0  ;;  %v2291_v21 = vld [vmem:[%s2607_s5] ss:$0 sm:$0xff] }
 0x1a0   : > { %v760_v46 = vmax.f32 %v734_v4, 0.0 }
 0x1a2   : > { %v770_v57 = vpack.c.bf16 %v760_v46, %v759_v22 }
 0x1a3   : > { %v738_v41 = vpop.f32.mrb[32].mxu0 }
 0x1a4   : > { %v739_v52 = vadd.f32 %v2243_v50, %v738_v41  ;;  %v1731_v19 = vpop.f32.mrb[33].mxu0  ;;  %1770 = vmatmul.mubr.msk.bf16.gmra.mrb[28].mxu1 %vm612_vm2, %v770_v57 }
 0x1a5   : > { %v741_v60 = vpop.f32.mrb[34].mxu0  ;;  %1773 = vmatprep.mubr.msk.bf16.mxu1 %vm1840_vm0, %v2622_v42 }
 0x1a6   : > { %v742_v51 = vadd.f32 %v2243_v50, %v741_v60  ;;  %v1732_v3 = vpop.f32.mrb[35].mxu0  ;;  %v761_v1 = vmax.f32 %v739_v52, 0.0 }
 0x1a8   : > { %v762_v61 = vmax.f32 %v742_v51, 0.0 }
 0x1aa   : > { %v771_v35 = vpack.c.bf16 %v762_v61, %v761_v1  ;;  %v1232_v61 = vpop.permute.xlu0 %1231 }
 0x1ac   : > { %1774 = vmatmul.mubr.msk.bf16.gmra.mrb[32].mxu1 %vm612_vm2, %v771_v35 }
 0x23f   : > { %v872_v4 = vpop.f32.mrb[0].mxu1 }
 0x240   : > { %v873_v38 = vadd.f32 %v2291_v21, %v872_v4  ;;  %v1743_v22 = vpop.f32.mrb[1].mxu1 }
 0x241   : > { %v875_v46 = vpop.f32.mrb[2].mxu1 }
 0x242   : > { %v1643_v57 = vadd.f32 -0.01, %v873_v38  ;;  %v997_v42 = vadd.f32 0.01, %v873_v38  ;;  %v876_v50 = vadd.f32 %v2291_v21, %v875_v46  ;;  %v1744_v41 = vpop.f32.mrb[3].mxu1 }
 0x243   : > { %vm943_vm3 = vcmp.gt.f32.partialorder %v873_v38, 0.01  ;;  %vm979_vm4 = vcmp.lt.f32.partialorder %v873_v38, -0.01 }
 0x244   : > { %v1644_v52 = vadd.f32 -0.01, %v876_v50  ;;  %v998_v19 = vadd.f32 0.01, %v876_v50  ;;  %v1015_v60 = vsel %vm979_vm4, %v997_v42, 0.0 }
 0x245   : > { %v2295_v51 = vsel %vm943_vm3, %v1643_v57, %v1015_v60  ;;  %vm980_vm5 = vcmp.lt.f32.partialorder %v876_v50, -0.01  ;;  %vm944_vm6 = vcmp.gt.f32.partialorder %v876_v50, 0.01  ;;  %v1234_v57 = vpop.permute.xlu1 %1233 }
 0x246   : > { %v1016_v3 = vsel %vm980_vm5, %v998_v19, 0.0  ;;  %v1069_v1 = vmul.f32 %v2295_v51, %v2118_v43  ;;  %v1285_v50 = vmul.f32 %v1232_v61, %v2295_v51 }
 0x247   : > { %v2299_v35 = vsel %vm944_vm6, %v1644_v52, %v1016_v3  ;;  %v880_v4 = vpop.f32.mrb[4].mxu1 }
 0x248   : > { %v881_v22 = vadd.f32 %v2291_v21, %v880_v4  ;;  %1105 = vrot.lane.b32.xlu0 %v1069_v1, %s1842_s16  ;;  %v1747_v38 = vpop.f32.mrb[5].mxu1  ;;  %v1070_v46 = vmul.f32 %v2299_v35, %v2122_v45  ;;  %v1286_v60 = vmul.f32 %v1234_v57, %v2299_v35 }
 0x249   : > { %v883_v42 = vpop.f32.mrb[6].mxu1 }
 0x24a   : > { %v1645_v41 = vadd.f32 -0.01, %v881_v22  ;;  %v999_v19 = vadd.f32 0.01, %v881_v22  ;;  %v884_v43 = vadd.f32 %v2291_v21, %v883_v42  ;;  %1107 = vrot.lane.b32.xlu1 %v1070_v46, %s1842_s16  ;;  %v1748_v52 = vpop.f32.mrb[7].mxu1  ;;  %v1236_v46 = vpop.permute.xlu0 %1235 }
 0x24b   : > { %vm945_vm7 = vcmp.gt.f32.partialorder %v881_v22, 0.01  ;;  %vm981_vm8 = vcmp.lt.f32.partialorder %v881_v22, -0.01 }
 0x24c   : > { %v1646_v3 = vadd.f32 -0.01, %v884_v43  ;;  %v1000_v1 = vadd.f32 0.01, %v884_v43  ;;  %1321 = vrot.lane.b32.xlu0 %v1285_v50, %s1842_s16  ;;  %v1017_v45 = vsel %vm981_vm8, %v999_v19, 0.0  ;;  %v1238_v19 = vpop.permute.xlu1 %1237 }
 0x24d   : > { %v2310_v4 = vsel %vm945_vm7, %v1645_v41, %v1017_v45  ;;  %vm982_vm9 = vcmp.lt.f32.partialorder %v884_v43, -0.01  ;;  %vm946_vm10 = vcmp.gt.f32.partialorder %v884_v43, 0.01 }
 0x24e   : > { %1323 = vrot.lane.b32.xlu1 %v1286_v60, %s1842_s16  ;;  %v1018_v61 = vsel %vm982_vm9, %v1000_v1, 0.0  ;;  %v1071_v38 = vmul.f32 %v2310_v4, %v2120_v44  ;;  %v1287_v43 = vmul.f32 %v1236_v46, %v2310_v4 }
 0x24f   : > { %v2315_v42 = vsel %vm946_vm10, %v1646_v3, %v1018_v61  ;;  %v888_v22 = vpop.f32.mrb[8].mxu1 }
 0x250   : > { %v889_v57 = vadd.f32 %v2291_v21, %v888_v22  ;;  %1109 = vrot.lane.b32.xlu0 %v1071_v38, %s1842_s16  ;;  %v1751_v50 = vpop.f32.mrb[9].mxu1  ;;  %v1072_v41 = vmul.f32 %v2315_v42, %v2130_v49  ;;  %v1288_v45 = vmul.f32 %v1238_v19, %v2315_v42 }
 0x251   : > { %v891_v52 = vpop.f32.mrb[10].mxu1 }
 0x252   : > { %v1647_v60 = vadd.f32 -0.01, %v889_v57  ;;  %v1001_v1 = vadd.f32 0.01, %v889_v57  ;;  %v892_v44 = vadd.f32 %v2291_v21, %v891_v52  ;;  %1111 = vrot.lane.b32.xlu1 %v1072_v41, %s1842_s16  ;;  %v1752_v3 = vpop.f32.mrb[11].mxu1  ;;  %v1240_v41 = vpop.permute.xlu0 %1239 }
 0x253   : > { %vm947_vm11 = vcmp.gt.f32.partialorder %v889_v57, 0.01  ;;  %vm983_vm12 = vcmp.lt.f32.partialorder %v889_v57, -0.01 }
 0x254   : > { %v1648_v61 = vadd.f32 -0.01, %v892_v44  ;;  %v1002_v38 = vadd.f32 0.01, %v892_v44  ;;  %1325 = vrot.lane.b32.xlu0 %v1287_v43, %s1842_s16  ;;  %v1019_v49 = vsel %vm983_vm12, %v1001_v1, 0.0  ;;  %v1242_v1 = vpop.permute.xlu1 %1241 }
 0x255   : > { %v2326_v22 = vsel %vm947_vm11, %v1647_v60, %v1019_v49  ;;  %vm984_vm13 = vcmp.lt.f32.partialorder %v892_v44, -0.01  ;;  %vm948_vm14 = vcmp.gt.f32.partialorder %v892_v44, 0.01 }
 0x256   : > { %1327 = vrot.lane.b32.xlu1 %v1288_v45, %s1842_s16  ;;  %v1020_v46 = vsel %vm984_vm13, %v1002_v38, 0.0  ;;  %v1073_v50 = vmul.f32 %v2326_v22, %v2143_v54  ;;  %v1289_v44 = vmul.f32 %v1240_v41, %v2326_v22 }
 0x257   : > { %v2331_v52 = vsel %vm948_vm14, %v1648_v61, %v1020_v46  ;;  %v896_v57 = vpop.f32.mrb[12].mxu1 }
 0x258   : > { %v897_v19 = vadd.f32 %v2291_v21, %v896_v57  ;;  %1113 = vrot.lane.b32.xlu0 %v1073_v50, %s1842_s16  ;;  %v1755_v43 = vpop.f32.mrb[13].mxu1  ;;  %v1074_v60 = vmul.f32 %v2331_v52, %v2141_v53  ;;  %v1290_v49 = vmul.f32 %v1242_v1, %v2331_v52 }
 0x259   : > { %v899_v3 = vpop.f32.mrb[14].mxu1 }
 0x25a   : > { %v1649_v45 = vadd.f32 -0.01, %v897_v19  ;;  %v1003_v38 = vadd.f32 0.01, %v897_v19  ;;  %v900_v54 = vadd.f32 %v2291_v21, %v899_v3  ;;  %1115 = vrot.lane.b32.xlu1 %v1074_v60, %s1842_s16  ;;  %v1756_v61 = vpop.f32.mrb[15].mxu1  ;;  %v1244_v60 = vpop.permute.xlu0 %1243 }
 0x25b   : > { %vm949_vm15 = vcmp.gt.f32.partialorder %v897_v19, 0.01  ;;  %vm985_vm0 = vcmp.lt.f32.partialorder %v897_v19, -0.01 }
 0x25c   : > { %v1650_v46 = vadd.f32 -0.01, %v900_v54  ;;  %v1004_v50 = vadd.f32 0.01, %v900_v54  ;;  %1329 = vrot.lane.b32.xlu0 %v1289_v44, %s1842_s16  ;;  %v1021_v53 = vsel %vm985_vm0, %v1003_v38, 0.0  ;;  %v1246_v38 = vpop.permute.xlu1 %1245 }
 0x25d   : > { %v2342_v57 = vsel %vm949_vm15, %v1649_v45, %v1021_v53  ;;  %vm986_vm2 = vcmp.lt.f32.partialorder %v900_v54, -0.01  ;;  %vm950_vm3 = vcmp.gt.f32.partialorder %v900_v54, 0.01 }
 0x25e   : > { %1331 = vrot.lane.b32.xlu1 %v1290_v49, %s1842_s16  ;;  %v1022_v41 = vsel %vm986_vm2, %v1004_v50, 0.0  ;;  %v1075_v43 = vmul.f32 %v2342_v57, %v2156_v59  ;;  %v1291_v54 = vmul.f32 %v1244_v60, %v2342_v57 }
 0x25f   : > { %v2347_v3 = vsel %vm950_vm3, %v1650_v46, %v1022_v41  ;;  %v904_v19 = vpop.f32.mrb[16].mxu1 }
 0x260   : > { %v905_v1 = vadd.f32 %v2291_v21, %v904_v19  ;;  %1117 = vrot.lane.b32.xlu0 %v1075_v43, %s1842_s16  ;;  %v1759_v44 = vpop.f32.mrb[17].mxu1  ;;  %v1076_v45 = vmul.f32 %v2347_v3, %v2154_v58  ;;  %v1292_v53 = vmul.f32 %v1246_v38, %v2347_v3 }
 0x261   : > { %v907_v61 = vpop.f32.mrb[18].mxu1 }
 0x262   : > { %v1651_v49 = vadd.f32 -0.01, %v905_v1  ;;  %v1005_v50 = vadd.f32 0.01, %v905_v1  ;;  %v908_v59 = vadd.f32 %v2291_v21, %v907_v61  ;;  %1119 = vrot.lane.b32.xlu1 %v1076_v45, %s1842_s16  ;;  %v1760_v46 = vpop.f32.mrb[19].mxu1  ;;  %v1248_v45 = vpop.permute.xlu0 %1247 }
 0x263   : > { %vm951_vm4 = vcmp.gt.f32.partialorder %v905_v1, 0.01  ;;  %vm987_vm5 = vcmp.lt.f32.partialorder %v905_v1, -0.01 }
 0x264   : > { %v1652_v41 = vadd.f32 -0.01, %v908_v59  ;;  %v1006_v43 = vadd.f32 0.01, %v908_v59  ;;  %1333 = vrot.lane.b32.xlu0 %v1291_v54, %s1842_s16  ;;  %v1023_v58 = vsel %vm987_vm5, %v1005_v50, 0.0  ;;  %v1250_v50 = vpop.permute.xlu1 %1249 }
 0x265   : > { %v2358_v19 = vsel %vm951_vm4, %v1651_v49, %v1023_v58  ;;  %vm988_vm6 = vcmp.lt.f32.partialorder %v908_v59, -0.01  ;;  %vm952_vm7 = vcmp.gt.f32.partialorder %v908_v59, 0.01 }
 0x266   : > { %1335 = vrot.lane.b32.xlu1 %v1292_v53, %s1842_s16  ;;  %v1024_v60 = vsel %vm988_vm6, %v1006_v43, 0.0  ;;  %v1077_v44 = vmul.f32 %v2358_v19, %v2169_v0  ;;  %v1293_v59 = vmul.f32 %v1248_v45, %v2358_v19 }
 0x267   : > { %v2363_v61 = vsel %vm952_vm7, %v1652_v41, %v1024_v60  ;;  %v912_v1 = vpop.f32.mrb[20].mxu1 }
 0x268   : > { %v913_v38 = vadd.f32 %v2291_v21, %v912_v1  ;;  %1121 = vrot.lane.b32.xlu0 %v1077_v44, %s1842_s16  ;;  %v1763_v54 = vpop.f32.mrb[21].mxu1  ;;  %v1078_v49 = vmul.f32 %v2363_v61, %v2167_v63  ;;  %v1294_v58 = vmul.f32 %v1250_v50, %v2363_v61 }
 0x269   : > { %v915_v46 = vpop.f32.mrb[22].mxu1 }
 0x26a   : > { %v1653_v53 = vadd.f32 -0.01, %v913_v38  ;;  %v1007_v43 = vadd.f32 0.01, %v913_v38  ;;  %v916_v0 = vadd.f32 %v2291_v21, %v915_v46  ;;  %1123 = vrot.lane.b32.xlu1 %v1078_v49, %s1842_s16  ;;  %v1764_v41 = vpop.f32.mrb[23].mxu1  ;;  %v1252_v49 = vpop.permute.xlu0 %1251 }
 0x26b   : > { %vm953_vm8 = vcmp.gt.f32.partialorder %v913_v38, 0.01  ;;  %vm989_vm9 = vcmp.lt.f32.partialorder %v913_v38, -0.01 }
 0x26c   : > { %v1654_v60 = vadd.f32 -0.01, %v916_v0  ;;  %v1008_v44 = vadd.f32 0.01, %v916_v0  ;;  %1337 = vrot.lane.b32.xlu0 %v1293_v59, %s1842_s16  ;;  %v1025_v63 = vsel %vm989_vm9, %v1007_v43, 0.0  ;;  %v1254_v43 = vpop.permute.xlu1 %1253 }
 0x26d   : > { %v2374_v1 = vsel %vm953_vm8, %v1653_v53, %v1025_v63  ;;  %vm990_vm10 = vcmp.lt.f32.partialorder %v916_v0, -0.01  ;;  %vm954_vm11 = vcmp.gt.f32.partialorder %v916_v0, 0.01 }
 0x26e   : > { %1339 = vrot.lane.b32.xlu1 %v1294_v58, %s1842_s16  ;;  %v1026_v45 = vsel %vm990_vm10, %v1008_v44, 0.0  ;;  %v1079_v54 = vmul.f32 %v2374_v1, %v2182_v8  ;;  %v1295_v0 = vmul.f32 %v1252_v49, %v2374_v1 }
 0x26f   : > { %v2379_v46 = vsel %vm954_vm11, %v1654_v60, %v1026_v45  ;;  %v920_v38 = vpop.f32.mrb[24].mxu1 }
 0x270   : > { %v921_v50 = vadd.f32 %v2291_v21, %v920_v38  ;;  %1125 = vrot.lane.b32.xlu0 %v1079_v54, %s1842_s16  ;;  %v1767_v59 = vpop.f32.mrb[25].mxu1  ;;  %v1080_v53 = vmul.f32 %v2379_v46, %v2180_v6  ;;  %v1296_v63 = vmul.f32 %v1254_v43, %v2379_v46 }
 0x271   : > { %v923_v41 = vpop.f32.mrb[26].mxu1 }
 0x272   : > { %v1655_v58 = vadd.f32 -0.01, %v921_v50  ;;  %v1009_v44 = vadd.f32 0.01, %v921_v50  ;;  %v924_v8 = vadd.f32 %v2291_v21, %v923_v41  ;;  %1127 = vrot.lane.b32.xlu1 %v1080_v53, %s1842_s16  ;;  %v1768_v60 = vpop.f32.mrb[27].mxu1  ;;  %v1256_v53 = vpop.permute.xlu0 %1255 }
 0x273   : > { %vm955_vm12 = vcmp.gt.f32.partialorder %v921_v50, 0.01  ;;  %vm991_vm13 = vcmp.lt.f32.partialorder %v921_v50, -0.01 }
 0x274   : > { %v1656_v45 = vadd.f32 -0.01, %v924_v8  ;;  %v1010_v54 = vadd.f32 0.01, %v924_v8  ;;  %1341 = vrot.lane.b32.xlu0 %v1295_v0, %s1842_s16  ;;  %v1027_v6 = vsel %vm991_vm13, %v1009_v44, 0.0  ;;  %v1258_v44 = vpop.permute.xlu1 %1257 }
 0x275   : > { %v2390_v38 = vsel %vm955_vm12, %v1655_v58, %v1027_v6  ;;  %vm992_vm14 = vcmp.lt.f32.partialorder %v924_v8, -0.01  ;;  %vm956_vm15 = vcmp.gt.f32.partialorder %v924_v8, 0.01 }
 0x276   : > { %1343 = vrot.lane.b32.xlu1 %v1296_v63, %s1842_s16  ;;  %v1028_v49 = vsel %vm992_vm14, %v1010_v54, 0.0  ;;  %v1081_v59 = vmul.f32 %v2390_v38, %v2195_v48  ;;  %v1297_v8 = vmul.f32 %v1256_v53, %v2390_v38 }
 0x277   : > { %v2395_v41 = vsel %vm956_vm15, %v1656_v45, %v1028_v49  ;;  %v928_v50 = vpop.f32.mrb[28].mxu1 }
 0x278   : > { %v929_v43 = vadd.f32 %v2291_v21, %v928_v50  ;;  %1129 = vrot.lane.b32.xlu0 %v1081_v59, %s1842_s16  ;;  %v1771_v0 = vpop.f32.mrb[29].mxu1  ;;  %v1082_v58 = vmul.f32 %v2395_v41, %v2193_v47  ;;  %v1298_v6 = vmul.f32 %v1258_v44, %v2395_v41 }
 0x279   : > { %v931_v60 = vpop.f32.mrb[30].mxu1 }
 0x27a   : > { %v1657_v63 = vadd.f32 -0.01, %v929_v43  ;;  %v1011_v54 = vadd.f32 0.01, %v929_v43  ;;  %v932_v48 = vadd.f32 %v2291_v21, %v931_v60  ;;  %1131 = vrot.lane.b32.xlu1 %v1082_v58, %s1842_s16  ;;  %v1772_v45 = vpop.f32.mrb[31].mxu1  ;;  %v1260_v58 = vpop.permute.xlu0 %1259 }
 0x27b   : > { %vm957_vm0 = vcmp.gt.f32.partialorder %v929_v43, 0.01  ;;  %vm993_vm2 = vcmp.lt.f32.partialorder %v929_v43, -0.01 }
 0x27c   : > { %v1658_v49 = vadd.f32 -0.01, %v932_v48  ;;  %v1012_v59 = vadd.f32 0.01, %v932_v48  ;;  %1345 = vrot.lane.b32.xlu0 %v1297_v8, %s1842_s16  ;;  %v1029_v47 = vsel %vm993_vm2, %v1011_v54, 0.0  ;;  %v1262_v54 = vpop.permute.xlu1 %1261 }
 0x27d   : > { %v2406_v50 = vsel %vm957_vm0, %v1657_v63, %v1029_v47  ;;  %vm994_vm3 = vcmp.lt.f32.partialorder %v932_v48, -0.01  ;;  %vm958_vm4 = vcmp.gt.f32.partialorder %v932_v48, 0.01 }
 0x27e   : > { %1347 = vrot.lane.b32.xlu1 %v1298_v6, %s1842_s16  ;;  %v1030_v53 = vsel %vm994_vm3, %v1012_v59, 0.0  ;;  %v1083_v0 = vmul.f32 %v2406_v50, %v2208_v56  ;;  %v1299_v48 = vmul.f32 %v1260_v58, %v2406_v50 }
 0x27f   : > { %v2411_v60 = vsel %vm958_vm4, %v1658_v49, %v1030_v53  ;;  %v936_v43 = vpop.f32.mrb[32].mxu1 }
 0x280   : > { %v937_v44 = vadd.f32 %v2291_v21, %v936_v43  ;;  %1133 = vrot.lane.b32.xlu0 %v1083_v0, %s1842_s16  ;;  %v1775_v8 = vpop.f32.mrb[33].mxu1  ;;  %v1084_v63 = vmul.f32 %v2411_v60, %v2206_v55  ;;  %v1300_v47 = vmul.f32 %v1262_v54, %v2411_v60  ;;  %v1266_v54 = vpop.permute.xlu1 %1265 }
 0x281   : > { %v939_v45 = vpop.f32.mrb[34].mxu1  ;;  %v1264_v8 = vpop.permute.xlu0 %1263 }
 0x282   : > { %v1659_v6 = vadd.f32 -0.01, %v937_v44  ;;  %v1013_v59 = vadd.f32 0.01, %v937_v44  ;;  %v940_v56 = vadd.f32 %v2291_v21, %v939_v45  ;;  %1135 = vrot.lane.b32.xlu1 %v1084_v63, %s1842_s16  ;;  %v1776_v49 = vpop.f32.mrb[35].mxu1 }
 0x283   : > { %vm959_vm5 = vcmp.gt.f32.partialorder %v937_v44, 0.01  ;;  %vm995_vm6 = vcmp.lt.f32.partialorder %v937_v44, -0.01 }
 0x284   : > { %v1660_v53 = vadd.f32 -0.01, %v940_v56  ;;  %v1014_v0 = vadd.f32 0.01, %v940_v56  ;;  %1349 = vrot.lane.b32.xlu0 %v1299_v48, %s1842_s16  ;;  %v1031_v55 = vsel %vm995_vm6, %v1013_v59, 0.0  ;;  %v1052_v59 = vmul.f32 %v2299_v35, %v2024_v24  ;;  %v1814_v24 = vld [vmem:[%s1923_s15 + $0x8] sm:$0xff] }
 0x285   : > { %v2422_v43 = vsel %vm959_vm5, %v1659_v6, %v1031_v55  ;;  %vm996_vm7 = vcmp.lt.f32.partialorder %v940_v56, -0.01  ;;  %vm960_vm8 = vcmp.gt.f32.partialorder %v940_v56, 0.01  ;;  %v1196_v55 = vmul.f32 %v1814_v24, %v2299_v35 }
 0x286   : > { %1351 = vrot.lane.b32.xlu1 %v1300_v47, %s1842_s16  ;;  %v1032_v21 = vsel %vm996_vm7, %v1014_v0, 0.0  ;;  %v1085_v58 = vmul.f32 %v2422_v43, %v2221_v2  ;;  %v1301_v45 = vmul.f32 %v1264_v8, %v2422_v43  ;;  %v1051_v2 = vmul.f32 %v2295_v51, %v2021_v23  ;;  %v1813_v47 = vld [vmem:[%s1923_s15] sm:$0xff] }
 0x287   : > { %v2427_v44 = vsel %vm960_vm8, %v1660_v53, %v1032_v21  ;;  %v1195_v53 = vmul.f32 %v1813_v47, %v2295_v51 }
 0x288   : > { %1137 = vrot.lane.b32.xlu0 %v1085_v58, %s1842_s16  ;;  %v1086_v63 = vmul.f32 %v2427_v44, %v2219_v62  ;;  %v1302_v48 = vmul.f32 %v1266_v54, %v2427_v44  ;;  %v1053_v58 = vmul.f32 %v2310_v4, %v2031_v25  ;;  %v1054_v54 = vmul.f32 %v2315_v42, %v2034_v26 }
 0x28a   : > { %1139 = vrot.lane.b32.xlu1 %v1086_v63, %s1842_s16 }
 0x28c   : > { %1353 = vrot.lane.b32.xlu0 %v1301_v45, %s1842_s16 }
 0x28e   : > { %1355 = vrot.lane.b32.xlu1 %v1302_v48, %s1842_s16  ;;  %v1197_v48 = vmul.f32 %v2310_v4, %v1928_v5  ;;  %v1056_v4 = vmul.f32 %v2331_v52, %v2041_v27 }
 0x2ba   : > { %v1106_v62 = vpop.permute.xlu0 %1105 }
 0x2bb   : > { %v1159_v6 = vsub.f32 %v1051_v2, %v1106_v62  ;;  %v1198_v62 = vmul.f32 %v2315_v42, %v1935_v7  ;;  %v1199_v42 = vmul.f32 %v2326_v22, %v1948_v10 }
 0x2bc   : > { %v1108_v56 = vpop.permute.xlu1 %1107 }
 0x2bd   : > { %1177 = vst.msk [vmem:[%s2443_s19] sm:$0xff] %vm545_vm1, %v1159_v6  ;;  %v1160_v49 = vsub.f32 %v1052_v59, %v1108_v56  ;;  %v1055_v59 = vmul.f32 %v2326_v22, %v2044_v28  ;;  %v1058_v22 = vmul.f32 %v2347_v3, %v2051_v29 }
 0x2be   : > { %v1322_v23 = vpop.permute.xlu0 %1321 }
 0x2bf   : > { %1178 = vst.msk [vmem:[%s2443_s19 + $0x8] sm:$0xff] %vm545_vm1, %v1160_v49  ;;  %v1375_v0 = vadd.f32 %v1322_v23, %v1195_v53  ;;  %v1200_v53 = vmul.f32 %v2331_v52, %v1945_v9  ;;  %v1201_v52 = vmul.f32 %v2342_v57, %v1958_v12 }
 0x2c0   : > { %v1324_v21 = vpop.permute.xlu1 %1323 }
 0x2c1   : > { %1393 = vst.msk [vmem:[%s2455_s22] sm:$0xff] %vm545_vm1, %v1375_v0  ;;  %v1376_v51 = vadd.f32 %v1324_v21, %v1196_v55  ;;  %v1057_v0 = vmul.f32 %v2342_v57, %v2054_v30  ;;  %v1060_v57 = vmul.f32 %v2363_v61, %v2061_v31 }
 0x2c2   : > { %v1110_v8 = vpop.permute.xlu0 %1109 }
 0x2c3   : > { %1394 = vst.msk [vmem:[%s2455_s22 + $0x8] sm:$0xff] %vm545_vm1, %v1376_v51  ;;  %v1161_v63 = vsub.f32 %v1053_v58, %v1110_v8  ;;  %v1202_v51 = vmul.f32 %v2347_v3, %v1955_v11  ;;  %v1059_v8 = vmul.f32 %v2358_v19, %v2064_v32  ;;  %v1203_v3 = vmul.f32 %v2358_v19, %v1968_v14 }
 0x2c4   : > { %v1112_v45 = vpop.permute.xlu1 %1111  ;;  %v1062_v19 = vmul.f32 %v2379_v46, %v2071_v33 }
 0x2c5   : > { %1179 = vst.msk [vmem:[%s2443_s19 + $0x10] sm:$0xff] %vm545_vm1, %v1161_v63  ;;  %v1162_v35 = vsub.f32 %v1054_v54, %v1112_v45 }
 0x2c6   : > { %v1326_v2 = vpop.permute.xlu0 %1325 }
 0x2c7   : > { %1180 = vst.msk [vmem:[%s2443_s19 + $0x18] sm:$0xff] %vm545_vm1, %v1162_v35  ;;  %v1377_v25 = vadd.f32 %v1326_v2, %v1197_v48  ;;  %v1204_v35 = vmul.f32 %v2363_v61, %v1965_v13  ;;  %v1061_v2 = vmul.f32 %v2374_v1, %v2074_v34  ;;  %v1205_v61 = vmul.f32 %v2374_v1, %v1978_v16 }
 0x2c8   : > { %v1328_v6 = vpop.permute.xlu1 %1327  ;;  %v1064_v1 = vmul.f32 %v2395_v41, %v2087_v37 }
 0x2c9   : > { %1395 = vst.msk [vmem:[%s2455_s22 + $0x10] sm:$0xff] %vm545_vm1, %v1377_v25  ;;  %v1378_v26 = vadd.f32 %v1328_v6, %v1198_v62 }
 0x2ca   : > { %v1114_v56 = vpop.permute.xlu0 %1113 }
 0x2cb   : > { %1396 = vst.msk [vmem:[%s2455_s22 + $0x18] sm:$0xff] %vm545_vm1, %v1378_v26  ;;  %v1163_v5 = vsub.f32 %v1055_v59, %v1114_v56  ;;  %v1206_v26 = vmul.f32 %v2379_v46, %v1975_v15  ;;  %v1063_v56 = vmul.f32 %v2390_v38, %v2084_v36  ;;  %v1207_v46 = vmul.f32 %v2390_v38, %v1988_v18 }
 0x2cc   : > { %v1116_v49 = vpop.permute.xlu1 %1115  ;;  %v1066_v38 = vmul.f32 %v2411_v60, %v2101_v40 }
 0x2cd   : > { %1181 = vst.msk [vmem:[%s2443_s19 + $0x20] sm:$0xff] %vm545_vm1, %v1163_v5  ;;  %v1164_v7 = vsub.f32 %v1056_v4, %v1116_v49 }
 0x2ce   : > { %v1330_v47 = vpop.permute.xlu0 %1329 }
 0x2cf   : > { %1182 = vst.msk [vmem:[%s2443_s19 + $0x28] sm:$0xff] %vm545_vm1, %v1164_v7  ;;  %v1379_v28 = vadd.f32 %v1330_v47, %v1199_v42  ;;  %v1208_v7 = vmul.f32 %v2395_v41, %v1985_v17  ;;  %v1065_v47 = vmul.f32 %v2406_v50, %v2098_v39  ;;  %v1209_v41 = vmul.f32 %v2406_v50, %v1998_v20  ;;  %v2625_v50 = vld [vmem:[#allocation6_spill] sm:$0xff] }
 0x2d0   : > { %v1332_v23 = vpop.permute.xlu1 %1331 }
 0x2d1   : > { %1397 = vst.msk [vmem:[%s2455_s22 + $0x20] sm:$0xff] %vm545_vm1, %v1379_v28  ;;  %v1380_v27 = vadd.f32 %v1332_v23, %v1200_v53 }
 0x2d2   : > { %v1118_v24 = vpop.permute.xlu0 %1117 }
 0x2d3   : > { %1398 = vst.msk [vmem:[%s2455_s22 + $0x28] sm:$0xff] %vm545_vm1, %v1380_v27  ;;  %v1165_v10 = vsub.f32 %v1057_v0, %v1118_v24  ;;  %v2623_v27 = vld [vmem:[#allocation2_spill] sm:$0xff] }
 0x2d4   : > { %v1120_v55 = vpop.permute.xlu1 %1119  ;;  %v1210_v0 = vmul.f32 %v2411_v60, %v2623_v27 }
 0x2d5   : > { %1183 = vst.msk [vmem:[%s2443_s19 + $0x30] sm:$0xff] %vm545_vm1, %v1165_v10  ;;  %v1166_v9 = vsub.f32 %v1058_v22, %v1120_v55  ;;  %v2624_v10 = vld [vmem:[#allocation5_spill] sm:$0xff] }
 0x2d6   : > { %v1334_v21 = vpop.permute.xlu0 %1333  ;;  %v1067_v22 = vmul.f32 %v2422_v43, %v2624_v10 }
 0x2d7   : > { %1184 = vst.msk [vmem:[%s2443_s19 + $0x38] sm:$0xff] %vm545_vm1, %v1166_v9  ;;  %v1381_v30 = vadd.f32 %v1334_v21, %v1201_v52  ;;  %v1068_v9 = vmul.f32 %v2427_v44, %v2625_v50  ;;  %v2626_v21 = vld [vmem:[#allocation4_spill] sm:$0xff] }
 0x2d8   : > { %v1336_v58 = vpop.permute.xlu1 %1335 }
 0x2d9   : > { %1399 = vst.msk [vmem:[%s2455_s22 + $0x30] sm:$0xff] %vm545_vm1, %v1381_v30  ;;  %v1382_v29 = vadd.f32 %v1336_v58, %v1202_v51  ;;  %v1211_v30 = vmul.f32 %v2422_v43, %v2626_v21 }
 0x2da   : > { %v1122_v63 = vpop.permute.xlu0 %1121 }
 0x2db   : > { %1400 = vst.msk [vmem:[%s2455_s22 + $0x38] sm:$0xff] %vm545_vm1, %v1382_v29  ;;  %v1167_v12 = vsub.f32 %v1059_v8, %v1122_v63  ;;  %v2627_v29 = vld [vmem:[#allocation3_spill] sm:$0xff] }
 0x2dc   : > { %v1124_v54 = vpop.permute.xlu1 %1123  ;;  %v1212_v8 = vmul.f32 %v2427_v44, %v2627_v29 }
 0x2dd   : > { %1185 = vst.msk [vmem:[%s2443_s19 + $0x40] sm:$0xff] %vm545_vm1, %v1167_v12  ;;  %v1168_v11 = vsub.f32 %v1060_v57, %v1124_v54 }
 0x2de   : > { %v1338_v45 = vpop.permute.xlu0 %1337 }
 0x2df   : > { %1186 = vst.msk [vmem:[%s2443_s19 + $0x48] sm:$0xff] %vm545_vm1, %v1168_v11  ;;  %v1383_v32 = vadd.f32 %v1338_v45, %v1203_v3 }
 0x2e0   : > { %v1340_v48 = vpop.permute.xlu1 %1339 }
 0x2e1   : > { %1401 = vst.msk [vmem:[%s2455_s22 + $0x40] sm:$0xff] %vm545_vm1, %v1383_v32  ;;  %v1384_v31 = vadd.f32 %v1340_v48, %v1204_v35 }
 0x2e2   : > { %v1126_v25 = vpop.permute.xlu0 %1125 }
 0x2e3   : > { %1402 = vst.msk [vmem:[%s2455_s22 + $0x48] sm:$0xff] %vm545_vm1, %v1384_v31  ;;  %v1169_v14 = vsub.f32 %v1061_v2, %v1126_v25 }
 0x2e4   : > { %v1128_v62 = vpop.permute.xlu1 %1127 }
 0x2e5   : > { %1187 = vst.msk [vmem:[%s2443_s19 + $0x50] sm:$0xff] %vm545_vm1, %v1169_v14  ;;  %v1170_v13 = vsub.f32 %v1062_v19, %v1128_v62 }
 0x2e6   : > { %v1342_v6 = vpop.permute.xlu0 %1341 }
 0x2e7   : > { %1188 = vst.msk [vmem:[%s2443_s19 + $0x58] sm:$0xff] %vm545_vm1, %v1170_v13  ;;  %v1385_v34 = vadd.f32 %v1342_v6, %v1205_v61 }
 0x2e8   : > { %v1344_v59 = vpop.permute.xlu1 %1343 }
 0x2e9   : > { %1403 = vst.msk [vmem:[%s2455_s22 + $0x50] sm:$0xff] %vm545_vm1, %v1385_v34  ;;  %v1386_v33 = vadd.f32 %v1344_v59, %v1206_v26 }
 0x2ea   : > { %v1130_v5 = vpop.permute.xlu0 %1129 }
 0x2eb   : > { %1404 = vst.msk [vmem:[%s2455_s22 + $0x58] sm:$0xff] %vm545_vm1, %v1386_v33  ;;  %v1171_v16 = vsub.f32 %v1063_v56, %v1130_v5 }
 0x2ec   : > { %v1132_v4 = vpop.permute.xlu1 %1131 }
 0x2ed   : > { %1189 = vst.msk [vmem:[%s2443_s19 + $0x60] sm:$0xff] %vm545_vm1, %v1171_v16  ;;  %v1172_v15 = vsub.f32 %v1064_v1, %v1132_v4 }
 0x2ee   : > { %v1346_v49 = vpop.permute.xlu0 %1345 }
 0x2ef   : > { %1190 = vst.msk [vmem:[%s2443_s19 + $0x68] sm:$0xff] %vm545_vm1, %v1172_v15  ;;  %v1387_v36 = vadd.f32 %v1346_v49, %v1207_v46 }
 0x2f0   : > { %v1348_v42 = vpop.permute.xlu1 %1347 }
 0x2f1   : > { %1405 = vst.msk [vmem:[%s2455_s22 + $0x60] sm:$0xff] %vm545_vm1, %v1387_v36  ;;  %v1388_v37 = vadd.f32 %v1348_v42, %v1208_v7 }
 0x2f2   : > { %v1134_v28 = vpop.permute.xlu0 %1133 }
 0x2f3   : > { %1406 = vst.msk [vmem:[%s2455_s22 + $0x68] sm:$0xff] %vm545_vm1, %v1388_v37  ;;  %v1173_v18 = vsub.f32 %v1065_v47, %v1134_v28 }
 0x2f4   : > { %v1136_v53 = vpop.permute.xlu1 %1135 }
 0x2f5   : > { %1191 = vst.msk [vmem:[%s2443_s19 + $0x70] sm:$0xff] %vm545_vm1, %v1173_v18  ;;  %v1174_v17 = vsub.f32 %v1066_v38, %v1136_v53 }
 0x2f6   : > { %v1350_v23 = vpop.permute.xlu0 %1349 }
 0x2f7   : > { %1192 = vst.msk [vmem:[%s2443_s19 + $0x78] sm:$0xff] %vm545_vm1, %v1174_v17  ;;  %v1389_v39 = vadd.f32 %v1350_v23, %v1209_v41 }
 0x2f8   : > { %v1352_v24 = vpop.permute.xlu1 %1351 }
 0x2f9   : > { %1407 = vst.msk [vmem:[%s2455_s22 + $0x70] sm:$0xff] %vm545_vm1, %v1389_v39  ;;  %v1390_v40 = vadd.f32 %v1352_v24, %v1210_v0 }
 0x2fa   : > { %v1138_v55 = vpop.permute.xlu0 %1137 }
 0x2fb   : > { %1408 = vst.msk [vmem:[%s2455_s22 + $0x78] sm:$0xff] %vm545_vm1, %v1390_v40  ;;  %v1175_v20 = vsub.f32 %v1067_v22, %v1138_v55 }
 0x2fc   : > { %v1140_v52 = vpop.permute.xlu1 %1139 }
 0x2fd   : > { %1193 = vst.msk [vmem:[%s2443_s19 + $0x80] sm:$0xff] %vm545_vm1, %v1175_v20  ;;  %v1176_v60 = vsub.f32 %v1068_v9, %v1140_v52 }
 0x2fe   : > { %v1354_v51 = vpop.permute.xlu0 %1353 }
 0x2ff   : > { %1194 = vst.msk [vmem:[%s2443_s19 + $0x88] sm:$0xff] %vm545_vm1, %v1176_v60  ;;  %v1391_v58 = vadd.f32 %v1354_v51, %v1211_v30 }
 0x300   : > { %v1356_v63 = vpop.permute.xlu1 %1355 }
 0x301   : > { %1409 = vst.msk [vmem:[%s2455_s22 + $0x80] sm:$0xff] %vm545_vm1, %v1391_v58  ;;  %v1392_v12 = vadd.f32 %v1356_v63, %v1212_v8 }
 0x303   : > { %1410 = vst.msk [vmem:[%s2455_s22 + $0x88] sm:$0xff] %vm545_vm1, %v1392_v12 }
 0x304 PF: > { %s18_s26 = sadd.s32 1, %s1837_s26   ;;  %s2628_s24 = smov %s1833_s25 }
 0x305   : > { %p15_p5 = scmp.ge.s32.totalorder %s18_s26, 4   ;;  %s2629_s25 = smov %s2631_s27 }
 0x307   :  { %17 = sbr.rel (!%p15_p5) target bundleno = 2 (0x2), region = 101 }

</bundles_post_ra>
